<compile_context>
chip_gen: v5e
topology: v5e:2x2
jax: 0.10.0
libtpu: 0.0.40
codegen_flags: <defaults>
</compile_context>

<pallas_src>
import jax
import jax.numpy as jnp
from jax.experimental import pallas as pl
from jax.experimental.pallas import tpu as pltpu

# ----------------------------- problem sizes -------------------------------
B = 2        # batch
N = 16       # node_num
DI = 4       # dim_in
DO = 32      # dim_out == hidden_dim
K = 3        # cheb_k
DE = 8       # embed_dim
C = DI + DO  # concatenated feature size (parameter shapes only)


# ------------------------------ kernel body --------------------------------
def agcrn_cell_kernel(x_ref, state_ref, emb_ref,
                      wx_ref, wgs_ref, wus_ref, ball_ref, h_ref):
    x2 = x_ref[...]        # [B*N, DI]
    st = state_ref[...]    # [B*N, DO]
    E = emb_ref[...]       # [N, DE]

    # --- adaptive adjacency: softmax(relu(E @ E^T), axis=1) -----------------
    # relu keeps logits >= 0 and bounded, so the row-max shift is dropped
    # (review #9); exp() cannot overflow in f32 for these embedding scales.
    S = jnp.maximum(jnp.dot(E, E.T, preferred_element_type=jnp.float32), 0.0)
    eS = jnp.exp(S)
    denom = jnp.sum(eS, axis=1, keepdims=True)
    inv = pl.reciprocal(denom, approx=True)      # EUP seed (free slot) ...
    inv = inv * (2.0 - denom * inv)              # ... + 1 NR step -> ~f32 exact
    A = eS * inv                                                    # [N, N]

    # --- stacked Chebyshev supports T1..T_{K-1} (T0 = I never materialised) -
    row = jax.lax.broadcasted_iota(jnp.int32, (N, N), 0)
    col = jax.lax.broadcasted_iota(jnp.int32, (N, N), 1)
    eye = (row == col).astype(jnp.float32)
    sups = [A]
    prev2, prev1 = eye, A
    for _ in range(2, K):
        cur = 2.0 * jnp.dot(A, prev1, preferred_element_type=jnp.float32) - prev2
        sups.append(cur)
        prev2, prev1 = prev1, cur
    Asup = jnp.concatenate(sups, axis=0)          # [(K-1)*N, N] (sublane concat)

    # node embeddings replicated across batch (rows follow [B*N, .] layout)
    E2 = jnp.concatenate([E] * B, axis=0)         # [B*N, DE]

    def cheb_conv(op2d, d):
        """x_g[bn, (k,i)]; one Asup matmul per operand, batches fused in lanes.

        T0 = I is handled as the operand itself (no identity matmul); the
        result split is at sublane offset N (8-aligned) / lane offset d."""
        cat = jnp.concatenate([op2d[b * N:(b + 1) * N, :] for b in range(B)],
                              axis=-1)                              # [N, B*d]
        g = jnp.dot(Asup, cat, preferred_element_type=jnp.float32)  # [(K-1)N, B*d]
        rows = []
        for b in range(B):
            pieces = [op2d[b * N:(b + 1) * N, :]]                   # k = 0
            for k in range(1, K):
                pieces.append(g[(k - 1) * N:k * N, b * d:(b + 1) * d])
            rows.append(jnp.concatenate(pieces, axis=-1))           # [N, K*d]
        return jnp.concatenate(rows, axis=0)                        # [B*N, K*d]

    def e_reduce(y, out_w, col_off):
        """pre[bn, o] = sum_d E2[bn, d] * y[bn, col_off + d*out_w + o]."""
        acc = E2[:, 0:1] * y[:, col_off:col_off + out_w]
        for d in range(1, DE):
            lo = col_off + d * out_w
            acc = acc + E2[:, d:d + 1] * y[:, lo:lo + out_w]
        return acc

    # gate + candidate biases in one matmul (review #3)
    bias_all = jnp.dot(E2, ball_ref[...],
                       preferred_element_type=jnp.float32)          # [B*N, 3*DO]

    # --- x-side graph conv, shared by gate AND candidate (one fused matmul) -
    xg_x = cheb_conv(x2, DI)                                        # [B*N, K*DI]
    y_x = jnp.dot(xg_x, wx_ref[...], preferred_element_type=jnp.float32)
    pre_xg = e_reduce(y_x, 2 * DO, 0)                               # [B*N, 2*DO]
    pre_xu = e_reduce(y_x, DO, DE * 2 * DO)                         # [B*N, DO]

    # --- gate: state-side graph conv (consumed immediately, review #8) ------
    xg_s = cheb_conv(st, DO)                                        # [B*N, K*DO]
    y_gs = jnp.dot(xg_s, wgs_ref[...], preferred_element_type=jnp.float32)
    pre_g = pre_xg + e_reduce(y_gs, 2 * DO, 0) + bias_all[:, :2 * DO]
    z_r = jax.nn.sigmoid(pre_g)                                     # [B*N, 2*DO]
    z = z_r[:, :DO]
    r = z_r[:, DO:]

    # --- candidate: state-side graph conv on z * state ----------------------
    xg_zs = cheb_conv(z * st, DO)
    y_us = jnp.dot(xg_zs, wus_ref[...], preferred_element_type=jnp.float32)
    pre_c = pre_xu + e_reduce(y_us, DO, 0) + bias_all[:, 2 * DO:]
    hc = jnp.tanh(pre_c)

    # --- GRU blend. Output is only 4 KiB; the masked [., 32] store is
    # accepted (lane-densifying it would cost an in-kernel relayout). --------
    h_ref[...] = r * st + (1.0 - r) * hc


# ------------------------------ host wrapper --------------------------------
def _flatten_pool(wpool, out_dim):
    """wpool [DE, K, C, out] -> x-rows [K*DI, DE*out], state-rows [K*DO, DE*out]
    with row order (k, i) and column order (d, o), matching the kernel."""
    wx = jnp.transpose(wpool[:, :, :DI, :], (1, 2, 0, 3)).reshape(K * DI,
                                                                  DE * out_dim)
    ws = jnp.transpose(wpool[:, :, DI:, :], (1, 2, 0, 3)).reshape(K * DO,
                                                                  DE * out_dim)
    return wx, ws


@jax.jit
def agcrn_cell(x, state, node_emb, wg_pool, bg_pool, wu_pool, bu_pool):
    """wg_pool: [DE, K, C, 2*DO], bg_pool: [DE, 2*DO],
       wu_pool: [DE, K, C, DO],   bu_pool: [DE, DO]."""
    wgx, wgs = _flatten_pool(wg_pool, 2 * DO)
    wux, wus = _flatten_pool(wu_pool, DO)
    # Fuse the x-side gate/candidate weights (shared LHS) and the biases.
    wx_all = jnp.concatenate([wgx, wux], axis=-1)        # [K*DI, DE*3*DO]
    b_all = jnp.concatenate([bg_pool, bu_pool], axis=-1)  # [DE, 3*DO]

    # [B, N, D] -> [B*N, D] (row b*N + n); fused under jit.
    x2 = x.reshape(B * N, DI)
    st2 = state.reshape(B * N, DO)

    vmem = pl.BlockSpec(memory_space=pltpu.MemorySpace.VMEM)
    h2 = pl.pallas_call(
        agcrn_cell_kernel,
        out_shape=jax.ShapeDtypeStruct((B * N, DO), jnp.float32),
        in_specs=[vmem] * 7,
        out_specs=vmem,
    )(x2, st2, node_emb, wx_all, wgs, wus, b_all)
    return h2.reshape(B, N, DO)


# --------------------------- pure-JAX reference ------------------------------
def agcrn_cell_ref(x, state, E, wg_pool, bg_pool, wu_pool, bu_pool):
    A = jax.nn.softmax(jax.nn.relu(E @ E.T), axis=1)
    supports = [jnp.eye(N, dtype=jnp.float32), A]
    for _ in range(2, K):
        supports.append(2.0 * A @ supports[-1] - supports[-2])
    supports = jnp.stack(supports, axis=0)

    def avwgcn(inp, wpool, bpool):
        weights = jnp.einsum('nd,dkio->nkio', E, wpool)
        bias = E @ bpool
        x_g = jnp.einsum('knm,bmc->bknc', supports, inp)
        x_g = jnp.transpose(x_g, (0, 2, 1, 3))
        return jnp.einsum('bnki,nkio->bno', x_g, weights) + bias

    z_r = jax.nn.sigmoid(avwgcn(jnp.concatenate([x, state], -1), wg_pool, bg_pool))
    z, r = z_r[..., :DO], z_r[..., DO:]
    hc = jnp.tanh(avwgcn(jnp.concatenate([x, z * state], -1), wu_pool, bu_pool))
    return r * state + (1.0 - r) * hc


# ---------------------------------- main -------------------------------------
if __name__ == "__main__":
    key = jax.random.PRNGKey(0)
    ks = jax.random.split(key, 7)

    x = jax.random.normal(ks[0], (B, N, DI), jnp.float32)
    state = jax.random.normal(ks[1], (B, N, DO), jnp.float32)
    node_emb = jax.random.normal(ks[2], (N, DE), jnp.float32)

    # Parameter shapes from AVWGCN.__init__: weights_pool [embed, cheb_k, in, out],
    # bias_pool [embed, out].
    wg_pool = 0.1 * jax.random.normal(ks[3], (DE, K, C, 2 * DO), jnp.float32)
    bg_pool = 0.1 * jax.random.normal(ks[4], (DE, 2 * DO), jnp.float32)
    wu_pool = 0.1 * jax.random.normal(ks[5], (DE, K, C, DO), jnp.float32)
    bu_pool = 0.1 * jax.random.normal(ks[6], (DE, DO), jnp.float32)

    h = agcrn_cell(x, state, node_emb, wg_pool, bg_pool, wu_pool, bu_pool)
    h = jax.block_until_ready(h)

    h_ref = agcrn_cell_ref(x, state, node_emb, wg_pool, bg_pool, wu_pool, bu_pool)
    assert h.shape == (B, N, DO)
    # 5e-4 tolerance covers the EUP-seeded reciprocal (+NR step) in the
    # adjacency softmax and the reordered f32 accumulations; all dots are f32.
    assert jnp.allclose(h, h_ref, atol=5e-4, rtol=5e-4), \
        f"max abs err {jnp.max(jnp.abs(h - h_ref))}"

    print("KERNEL_OK")
</pallas_src>

<mosaic_0001>
module attributes {stable_mosaic.version = 11 : i64} {
  func.func @agcrn_cell_kernel(%arg0: memref<32x4xf32, #tpu.memory_space<vmem>>, %arg1: memref<32x32xf32, #tpu.memory_space<vmem>>, %arg2: memref<16x8xf32, #tpu.memory_space<vmem>>, %arg3: memref<12x768xf32, #tpu.memory_space<vmem>>, %arg4: memref<96x512xf32, #tpu.memory_space<vmem>>, %arg5: memref<96x256xf32, #tpu.memory_space<vmem>>, %arg6: memref<8x96xf32, #tpu.memory_space<vmem>>, %arg7: memref<32x32xf32, #tpu.memory_space<vmem>>) attributes {dimension_semantics = [], scalar_prefetch = 0 : i64, scratch_operands = 0 : i64, tpu.core_type = #tpu.core_type<tc>} {
    %c0 = arith.constant 0 : index
    %c0_0 = arith.constant 0 : index
    %0 = vector.load %arg0[%c0, %c0_0] : memref<32x4xf32, #tpu.memory_space<vmem>>, vector<32x4xf32>
    %c0_1 = arith.constant 0 : index
    %c0_2 = arith.constant 0 : index
    %1 = vector.load %arg1[%c0_1, %c0_2] : memref<32x32xf32, #tpu.memory_space<vmem>>, vector<32x32xf32>
    %c0_3 = arith.constant 0 : index
    %c0_4 = arith.constant 0 : index
    %2 = vector.load %arg2[%c0_3, %c0_4] : memref<16x8xf32, #tpu.memory_space<vmem>>, vector<16x8xf32>
    %3 = tpu.transpose %2, [1, 0] : vector<16x8xf32> -> vector<8x16xf32>
    %cst = arith.constant dense<0.000000e+00> : vector<16x16xf32>
    %4 = tpu.matmul %2, %3, %cst {dimension_numbers = #tpu.dot_dimension_numbers<[1], [0], [0], [1], [0, 0, 1, 1], [], []>} : vector<16x8xf32>, vector<8x16xf32>, vector<16x16xf32> -> vector<16x16xf32>
    %cst_5 = arith.constant 0.000000e+00 : f32
    %5 = vector.broadcast %cst_5 : f32 to vector<16x16xf32>
    %6 = arith.maximumf %4, %5 : vector<16x16xf32>
    %7 = math.exp %6 : vector<16x16xf32>
    %cst_6 = arith.constant dense<0.000000e+00> : vector<16xf32>
    %8 = vector.multi_reduction <add>, %7, %cst_6 [1] : vector<16x16xf32> to vector<16xf32>
    %9 = vector.shape_cast %8 : vector<16xf32> to vector<16x1xf32>
    %10 = tpu.reciprocal %9 {approx = true} : vector<16x1xf32> -> vector<16x1xf32>
    %11 = arith.mulf %9, %10 : vector<16x1xf32>
    %cst_7 = arith.constant 2.000000e+00 : f32
    %12 = vector.broadcast %cst_7 : f32 to vector<16x1xf32>
    %13 = arith.subf %12, %11 : vector<16x1xf32>
    %14 = arith.mulf %10, %13 : vector<16x1xf32>
    %15 = vector.broadcast %14 : vector<16x1xf32> to vector<16x16xf32>
    %16 = arith.mulf %7, %15 : vector<16x16xf32>
    %17 = tpu.iota {dimensions = array<i32: 0>} : vector<16x16xi32>
    %18 = tpu.iota {dimensions = array<i32: 1>} : vector<16x16xi32>
    %19 = arith.cmpi eq, %17, %18 : vector<16x16xi32>
    %20 = arith.extui %19 : vector<16x16xi1> to vector<16x16xi32>
    %21 = arith.sitofp %20 : vector<16x16xi32> to vector<16x16xf32>
    %cst_8 = arith.constant dense<0.000000e+00> : vector<16x16xf32>
    %22 = tpu.matmul %16, %16, %cst_8 {dimension_numbers = #tpu.dot_dimension_numbers<[1], [0], [0], [1], [0, 0, 1, 1], [], []>} : vector<16x16xf32>, vector<16x16xf32>, vector<16x16xf32> -> vector<16x16xf32>
    %cst_9 = arith.constant 2.000000e+00 : f32
    %23 = vector.broadcast %cst_9 : f32 to vector<16x16xf32>
    %24 = arith.mulf %23, %22 : vector<16x16xf32>
    %25 = arith.subf %24, %21 : vector<16x16xf32>
    %26 = tpu.concatenate %16, %25 in 0 : vector<16x16xf32>, vector<16x16xf32> -> vector<32x16xf32>
    %27 = tpu.concatenate %2, %2 in 0 : vector<16x8xf32>, vector<16x8xf32> -> vector<32x8xf32>
    %c0_10 = arith.constant 0 : index
    %c0_11 = arith.constant 0 : index
    %28 = vector.load %arg6[%c0_10, %c0_11] : memref<8x96xf32, #tpu.memory_space<vmem>>, vector<8x96xf32>
    %cst_12 = arith.constant dense<0.000000e+00> : vector<32x96xf32>
    %29 = tpu.matmul %27, %28, %cst_12 {dimension_numbers = #tpu.dot_dimension_numbers<[1], [0], [0], [1], [0, 0, 1, 1], [], []>} : vector<32x8xf32>, vector<8x96xf32>, vector<32x96xf32> -> vector<32x96xf32>
    %30 = vector.extract_strided_slice %0 {offsets = [0, 0], sizes = [16, 4], strides = [1, 1]} : vector<32x4xf32> to vector<16x4xf32>
    %31 = vector.extract_strided_slice %0 {offsets = [16, 0], sizes = [16, 4], strides = [1, 1]} : vector<32x4xf32> to vector<16x4xf32>
    %32 = tpu.concatenate %30, %31 in 1 : vector<16x4xf32>, vector<16x4xf32> -> vector<16x8xf32>
    %cst_13 = arith.constant dense<0.000000e+00> : vector<32x8xf32>
    %33 = tpu.matmul %26, %32, %cst_13 {dimension_numbers = #tpu.dot_dimension_numbers<[1], [0], [0], [1], [0, 0, 1, 1], [], []>} : vector<32x16xf32>, vector<16x8xf32>, vector<32x8xf32> -> vector<32x8xf32>
    %34 = vector.extract_strided_slice %0 {offsets = [0, 0], sizes = [16, 4], strides = [1, 1]} : vector<32x4xf32> to vector<16x4xf32>
    %35 = vector.extract_strided_slice %33 {offsets = [0, 0], sizes = [16, 4], strides = [1, 1]} : vector<32x8xf32> to vector<16x4xf32>
    %36 = vector.extract_strided_slice %33 {offsets = [16, 0], sizes = [16, 4], strides = [1, 1]} : vector<32x8xf32> to vector<16x4xf32>
    %37 = tpu.concatenate %34, %35, %36 in 1 : vector<16x4xf32>, vector<16x4xf32>, vector<16x4xf32> -> vector<16x12xf32>
    %38 = vector.extract_strided_slice %0 {offsets = [16, 0], sizes = [16, 4], strides = [1, 1]} : vector<32x4xf32> to vector<16x4xf32>
    %39 = vector.extract_strided_slice %33 {offsets = [0, 4], sizes = [16, 4], strides = [1, 1]} : vector<32x8xf32> to vector<16x4xf32>
    %40 = vector.extract_strided_slice %33 {offsets = [16, 4], sizes = [16, 4], strides = [1, 1]} : vector<32x8xf32> to vector<16x4xf32>
    %41 = tpu.concatenate %38, %39, %40 in 1 : vector<16x4xf32>, vector<16x4xf32>, vector<16x4xf32> -> vector<16x12xf32>
    %42 = tpu.concatenate %37, %41 in 0 : vector<16x12xf32>, vector<16x12xf32> -> vector<32x12xf32>
    %c0_14 = arith.constant 0 : index
    %c0_15 = arith.constant 0 : index
    %43 = vector.load %arg3[%c0_14, %c0_15] : memref<12x768xf32, #tpu.memory_space<vmem>>, vector<12x768xf32>
    %cst_16 = arith.constant dense<0.000000e+00> : vector<32x768xf32>
    %44 = tpu.matmul %42, %43, %cst_16 {dimension_numbers = #tpu.dot_dimension_numbers<[1], [0], [0], [1], [0, 0, 1, 1], [], []>} : vector<32x12xf32>, vector<12x768xf32>, vector<32x768xf32> -> vector<32x768xf32>
    %45 = vector.extract_strided_slice %27 {offsets = [0, 0], sizes = [32, 1], strides = [1, 1]} : vector<32x8xf32> to vector<32x1xf32>
    %46 = vector.extract_strided_slice %44 {offsets = [0, 0], sizes = [32, 64], strides = [1, 1]} : vector<32x768xf32> to vector<32x64xf32>
    %47 = vector.broadcast %45 : vector<32x1xf32> to vector<32x64xf32>
    %48 = arith.mulf %47, %46 : vector<32x64xf32>
    %49 = vector.extract_strided_slice %27 {offsets = [0, 1], sizes = [32, 1], strides = [1, 1]} : vector<32x8xf32> to vector<32x1xf32>
    %50 = vector.extract_strided_slice %44 {offsets = [0, 64], sizes = [32, 64], strides = [1, 1]} : vector<32x768xf32> to vector<32x64xf32>
    %51 = vector.broadcast %49 : vector<32x1xf32> to vector<32x64xf32>
    %52 = arith.mulf %51, %50 : vector<32x64xf32>
    %53 = arith.addf %48, %52 : vector<32x64xf32>
    %54 = vector.extract_strided_slice %27 {offsets = [0, 2], sizes = [32, 1], strides = [1, 1]} : vector<32x8xf32> to vector<32x1xf32>
    %55 = vector.extract_strided_slice %44 {offsets = [0, 128], sizes = [32, 64], strides = [1, 1]} : vector<32x768xf32> to vector<32x64xf32>
    %56 = vector.broadcast %54 : vector<32x1xf32> to vector<32x64xf32>
    %57 = arith.mulf %56, %55 : vector<32x64xf32>
    %58 = arith.addf %53, %57 : vector<32x64xf32>
    %59 = vector.extract_strided_slice %27 {offsets = [0, 3], sizes = [32, 1], strides = [1, 1]} : vector<32x8xf32> to vector<32x1xf32>
    %60 = vector.extract_strided_slice %44 {offsets = [0, 192], sizes = [32, 64], strides = [1, 1]} : vector<32x768xf32> to vector<32x64xf32>
    %61 = vector.broadcast %59 : vector<32x1xf32> to vector<32x64xf32>
    %62 = arith.mulf %61, %60 : vector<32x64xf32>
    %63 = arith.addf %58, %62 : vector<32x64xf32>
    %64 = vector.extract_strided_slice %27 {offsets = [0, 4], sizes = [32, 1], strides = [1, 1]} : vector<32x8xf32> to vector<32x1xf32>
    %65 = vector.extract_strided_slice %44 {offsets = [0, 256], sizes = [32, 64], strides = [1, 1]} : vector<32x768xf32> to vector<32x64xf32>
    %66 = vector.broadcast %64 : vector<32x1xf32> to vector<32x64xf32>
    %67 = arith.mulf %66, %65 : vector<32x64xf32>
    %68 = arith.addf %63, %67 : vector<32x64xf32>
    %69 = vector.extract_strided_slice %27 {offsets = [0, 5], sizes = [32, 1], strides = [1, 1]} : vector<32x8xf32> to vector<32x1xf32>
    %70 = vector.extract_strided_slice %44 {offsets = [0, 320], sizes = [32, 64], strides = [1, 1]} : vector<32x768xf32> to vector<32x64xf32>
    %71 = vector.broadcast %69 : vector<32x1xf32> to vector<32x64xf32>
    %72 = arith.mulf %71, %70 : vector<32x64xf32>
    %73 = arith.addf %68, %72 : vector<32x64xf32>
    %74 = vector.extract_strided_slice %27 {offsets = [0, 6], sizes = [32, 1], strides = [1, 1]} : vector<32x8xf32> to vector<32x1xf32>
    %75 = vector.extract_strided_slice %44 {offsets = [0, 384], sizes = [32, 64], strides = [1, 1]} : vector<32x768xf32> to vector<32x64xf32>
    %76 = vector.broadcast %74 : vector<32x1xf32> to vector<32x64xf32>
    %77 = arith.mulf %76, %75 : vector<32x64xf32>
    %78 = arith.addf %73, %77 : vector<32x64xf32>
    %79 = vector.extract_strided_slice %27 {offsets = [0, 7], sizes = [32, 1], strides = [1, 1]} : vector<32x8xf32> to vector<32x1xf32>
    %80 = vector.extract_strided_slice %44 {offsets = [0, 448], sizes = [32, 64], strides = [1, 1]} : vector<32x768xf32> to vector<32x64xf32>
    %81 = vector.broadcast %79 : vector<32x1xf32> to vector<32x64xf32>
    %82 = arith.mulf %81, %80 : vector<32x64xf32>
    %83 = arith.addf %78, %82 : vector<32x64xf32>
    %84 = vector.extract_strided_slice %27 {offsets = [0, 0], sizes = [32, 1], strides = [1, 1]} : vector<32x8xf32> to vector<32x1xf32>
    %85 = vector.extract_strided_slice %44 {offsets = [0, 512], sizes = [32, 32], strides = [1, 1]} : vector<32x768xf32> to vector<32x32xf32>
    %86 = vector.broadcast %84 : vector<32x1xf32> to vector<32x32xf32>
    %87 = arith.mulf %86, %85 : vector<32x32xf32>
    %88 = vector.extract_strided_slice %27 {offsets = [0, 1], sizes = [32, 1], strides = [1, 1]} : vector<32x8xf32> to vector<32x1xf32>
    %89 = vector.extract_strided_slice %44 {offsets = [0, 544], sizes = [32, 32], strides = [1, 1]} : vector<32x768xf32> to vector<32x32xf32>
    %90 = vector.broadcast %88 : vector<32x1xf32> to vector<32x32xf32>
    %91 = arith.mulf %90, %89 : vector<32x32xf32>
    %92 = arith.addf %87, %91 : vector<32x32xf32>
    %93 = vector.extract_strided_slice %27 {offsets = [0, 2], sizes = [32, 1], strides = [1, 1]} : vector<32x8xf32> to vector<32x1xf32>
    %94 = vector.extract_strided_slice %44 {offsets = [0, 576], sizes = [32, 32], strides = [1, 1]} : vector<32x768xf32> to vector<32x32xf32>
    %95 = vector.broadcast %93 : vector<32x1xf32> to vector<32x32xf32>
    %96 = arith.mulf %95, %94 : vector<32x32xf32>
    %97 = arith.addf %92, %96 : vector<32x32xf32>
    %98 = vector.extract_strided_slice %27 {offsets = [0, 3], sizes = [32, 1], strides = [1, 1]} : vector<32x8xf32> to vector<32x1xf32>
    %99 = vector.extract_strided_slice %44 {offsets = [0, 608], sizes = [32, 32], strides = [1, 1]} : vector<32x768xf32> to vector<32x32xf32>
    %100 = vector.broadcast %98 : vector<32x1xf32> to vector<32x32xf32>
    %101 = arith.mulf %100, %99 : vector<32x32xf32>
    %102 = arith.addf %97, %101 : vector<32x32xf32>
    %103 = vector.extract_strided_slice %27 {offsets = [0, 4], sizes = [32, 1], strides = [1, 1]} : vector<32x8xf32> to vector<32x1xf32>
    %104 = vector.extract_strided_slice %44 {offsets = [0, 640], sizes = [32, 32], strides = [1, 1]} : vector<32x768xf32> to vector<32x32xf32>
    %105 = vector.broadcast %103 : vector<32x1xf32> to vector<32x32xf32>
    %106 = arith.mulf %105, %104 : vector<32x32xf32>
    %107 = arith.addf %102, %106 : vector<32x32xf32>
    %108 = vector.extract_strided_slice %27 {offsets = [0, 5], sizes = [32, 1], strides = [1, 1]} : vector<32x8xf32> to vector<32x1xf32>
    %109 = vector.extract_strided_slice %44 {offsets = [0, 672], sizes = [32, 32], strides = [1, 1]} : vector<32x768xf32> to vector<32x32xf32>
    %110 = vector.broadcast %108 : vector<32x1xf32> to vector<32x32xf32>
    %111 = arith.mulf %110, %109 : vector<32x32xf32>
    %112 = arith.addf %107, %111 : vector<32x32xf32>
    %113 = vector.extract_strided_slice %27 {offsets = [0, 6], sizes = [32, 1], strides = [1, 1]} : vector<32x8xf32> to vector<32x1xf32>
    %114 = vector.extract_strided_slice %44 {offsets = [0, 704], sizes = [32, 32], strides = [1, 1]} : vector<32x768xf32> to vector<32x32xf32>
    %115 = vector.broadcast %113 : vector<32x1xf32> to vector<32x32xf32>
    %116 = arith.mulf %115, %114 : vector<32x32xf32>
    %117 = arith.addf %112, %116 : vector<32x32xf32>
    %118 = vector.extract_strided_slice %27 {offsets = [0, 7], sizes = [32, 1], strides = [1, 1]} : vector<32x8xf32> to vector<32x1xf32>
    %119 = vector.extract_strided_slice %44 {offsets = [0, 736], sizes = [32, 32], strides = [1, 1]} : vector<32x768xf32> to vector<32x32xf32>
    %120 = vector.broadcast %118 : vector<32x1xf32> to vector<32x32xf32>
    %121 = arith.mulf %120, %119 : vector<32x32xf32>
    %122 = arith.addf %117, %121 : vector<32x32xf32>
    %123 = vector.extract_strided_slice %1 {offsets = [0, 0], sizes = [16, 32], strides = [1, 1]} : vector<32x32xf32> to vector<16x32xf32>
    %124 = vector.extract_strided_slice %1 {offsets = [16, 0], sizes = [16, 32], strides = [1, 1]} : vector<32x32xf32> to vector<16x32xf32>
    %125 = tpu.concatenate %123, %124 in 1 : vector<16x32xf32>, vector<16x32xf32> -> vector<16x64xf32>
    %cst_17 = arith.constant dense<0.000000e+00> : vector<32x64xf32>
    %126 = tpu.matmul %26, %125, %cst_17 {dimension_numbers = #tpu.dot_dimension_numbers<[1], [0], [0], [1], [0, 0, 1, 1], [], []>} : vector<32x16xf32>, vector<16x64xf32>, vector<32x64xf32> -> vector<32x64xf32>
    %127 = vector.extract_strided_slice %1 {offsets = [0, 0], sizes = [16, 32], strides = [1, 1]} : vector<32x32xf32> to vector<16x32xf32>
    %128 = vector.extract_strided_slice %126 {offsets = [0, 0], sizes = [16, 32], strides = [1, 1]} : vector<32x64xf32> to vector<16x32xf32>
    %129 = vector.extract_strided_slice %126 {offsets = [16, 0], sizes = [16, 32], strides = [1, 1]} : vector<32x64xf32> to vector<16x32xf32>
    %130 = tpu.concatenate %127, %128, %129 in 1 : vector<16x32xf32>, vector<16x32xf32>, vector<16x32xf32> -> vector<16x96xf32>
    %131 = vector.extract_strided_slice %1 {offsets = [16, 0], sizes = [16, 32], strides = [1, 1]} : vector<32x32xf32> to vector<16x32xf32>
    %132 = vector.extract_strided_slice %126 {offsets = [0, 32], sizes = [16, 32], strides = [1, 1]} : vector<32x64xf32> to vector<16x32xf32>
    %133 = vector.extract_strided_slice %126 {offsets = [16, 32], sizes = [16, 32], strides = [1, 1]} : vector<32x64xf32> to vector<16x32xf32>
    %134 = tpu.concatenate %131, %132, %133 in 1 : vector<16x32xf32>, vector<16x32xf32>, vector<16x32xf32> -> vector<16x96xf32>
    %135 = tpu.concatenate %130, %134 in 0 : vector<16x96xf32>, vector<16x96xf32> -> vector<32x96xf32>
    %c0_18 = arith.constant 0 : index
    %c0_19 = arith.constant 0 : index
    %136 = vector.load %arg4[%c0_18, %c0_19] : memref<96x512xf32, #tpu.memory_space<vmem>>, vector<96x512xf32>
    %cst_20 = arith.constant dense<0.000000e+00> : vector<32x512xf32>
    %137 = tpu.matmul %135, %136, %cst_20 {dimension_numbers = #tpu.dot_dimension_numbers<[1], [0], [0], [1], [0, 0, 1, 1], [], []>} : vector<32x96xf32>, vector<96x512xf32>, vector<32x512xf32> -> vector<32x512xf32>
    %138 = vector.extract_strided_slice %27 {offsets = [0, 0], sizes = [32, 1], strides = [1, 1]} : vector<32x8xf32> to vector<32x1xf32>
    %139 = vector.extract_strided_slice %137 {offsets = [0, 0], sizes = [32, 64], strides = [1, 1]} : vector<32x512xf32> to vector<32x64xf32>
    %140 = vector.broadcast %138 : vector<32x1xf32> to vector<32x64xf32>
    %141 = arith.mulf %140, %139 : vector<32x64xf32>
    %142 = vector.extract_strided_slice %27 {offsets = [0, 1], sizes = [32, 1], strides = [1, 1]} : vector<32x8xf32> to vector<32x1xf32>
    %143 = vector.extract_strided_slice %137 {offsets = [0, 64], sizes = [32, 64], strides = [1, 1]} : vector<32x512xf32> to vector<32x64xf32>
    %144 = vector.broadcast %142 : vector<32x1xf32> to vector<32x64xf32>
    %145 = arith.mulf %144, %143 : vector<32x64xf32>
    %146 = arith.addf %141, %145 : vector<32x64xf32>
    %147 = vector.extract_strided_slice %27 {offsets = [0, 2], sizes = [32, 1], strides = [1, 1]} : vector<32x8xf32> to vector<32x1xf32>
    %148 = vector.extract_strided_slice %137 {offsets = [0, 128], sizes = [32, 64], strides = [1, 1]} : vector<32x512xf32> to vector<32x64xf32>
    %149 = vector.broadcast %147 : vector<32x1xf32> to vector<32x64xf32>
    %150 = arith.mulf %149, %148 : vector<32x64xf32>
    %151 = arith.addf %146, %150 : vector<32x64xf32>
    %152 = vector.extract_strided_slice %27 {offsets = [0, 3], sizes = [32, 1], strides = [1, 1]} : vector<32x8xf32> to vector<32x1xf32>
    %153 = vector.extract_strided_slice %137 {offsets = [0, 192], sizes = [32, 64], strides = [1, 1]} : vector<32x512xf32> to vector<32x64xf32>
    %154 = vector.broadcast %152 : vector<32x1xf32> to vector<32x64xf32>
    %155 = arith.mulf %154, %153 : vector<32x64xf32>
    %156 = arith.addf %151, %155 : vector<32x64xf32>
    %157 = vector.extract_strided_slice %27 {offsets = [0, 4], sizes = [32, 1], strides = [1, 1]} : vector<32x8xf32> to vector<32x1xf32>
    %158 = vector.extract_strided_slice %137 {offsets = [0, 256], sizes = [32, 64], strides = [1, 1]} : vector<32x512xf32> to vector<32x64xf32>
    %159 = vector.broadcast %157 : vector<32x1xf32> to vector<32x64xf32>
    %160 = arith.mulf %159, %158 : vector<32x64xf32>
    %161 = arith.addf %156, %160 : vector<32x64xf32>
    %162 = vector.extract_strided_slice %27 {offsets = [0, 5], sizes = [32, 1], strides = [1, 1]} : vector<32x8xf32> to vector<32x1xf32>
    %163 = vector.extract_strided_slice %137 {offsets = [0, 320], sizes = [32, 64], strides = [1, 1]} : vector<32x512xf32> to vector<32x64xf32>
    %164 = vector.broadcast %162 : vector<32x1xf32> to vector<32x64xf32>
    %165 = arith.mulf %164, %163 : vector<32x64xf32>
    %166 = arith.addf %161, %165 : vector<32x64xf32>
    %167 = vector.extract_strided_slice %27 {offsets = [0, 6], sizes = [32, 1], strides = [1, 1]} : vector<32x8xf32> to vector<32x1xf32>
    %168 = vector.extract_strided_slice %137 {offsets = [0, 384], sizes = [32, 64], strides = [1, 1]} : vector<32x512xf32> to vector<32x64xf32>
    %169 = vector.broadcast %167 : vector<32x1xf32> to vector<32x64xf32>
    %170 = arith.mulf %169, %168 : vector<32x64xf32>
    %171 = arith.addf %166, %170 : vector<32x64xf32>
    %172 = vector.extract_strided_slice %27 {offsets = [0, 7], sizes = [32, 1], strides = [1, 1]} : vector<32x8xf32> to vector<32x1xf32>
    %173 = vector.extract_strided_slice %137 {offsets = [0, 448], sizes = [32, 64], strides = [1, 1]} : vector<32x512xf32> to vector<32x64xf32>
    %174 = vector.broadcast %172 : vector<32x1xf32> to vector<32x64xf32>
    %175 = arith.mulf %174, %173 : vector<32x64xf32>
    %176 = arith.addf %171, %175 : vector<32x64xf32>
    %177 = arith.addf %83, %176 : vector<32x64xf32>
    %178 = vector.extract_strided_slice %29 {offsets = [0, 0], sizes = [32, 64], strides = [1, 1]} : vector<32x96xf32> to vector<32x64xf32>
    %179 = arith.addf %177, %178 : vector<32x64xf32>
    %180 = arith.negf %179 : vector<32x64xf32>
    %181 = math.exp %180 : vector<32x64xf32>
    %cst_21 = arith.constant 1.000000e+00 : f32
    %182 = vector.broadcast %cst_21 : f32 to vector<32x64xf32>
    %183 = arith.addf %182, %181 : vector<32x64xf32>
    %184 = arith.divf %182, %183 : vector<32x64xf32>
    %185 = vector.extract_strided_slice %184 {offsets = [0, 0], sizes = [32, 32], strides = [1, 1]} : vector<32x64xf32> to vector<32x32xf32>
    %186 = vector.extract_strided_slice %184 {offsets = [0, 32], sizes = [32, 32], strides = [1, 1]} : vector<32x64xf32> to vector<32x32xf32>
    %187 = arith.mulf %185, %1 : vector<32x32xf32>
    %188 = vector.extract_strided_slice %187 {offsets = [0, 0], sizes = [16, 32], strides = [1, 1]} : vector<32x32xf32> to vector<16x32xf32>
    %189 = vector.extract_strided_slice %187 {offsets = [16, 0], sizes = [16, 32], strides = [1, 1]} : vector<32x32xf32> to vector<16x32xf32>
    %190 = tpu.concatenate %188, %189 in 1 : vector<16x32xf32>, vector<16x32xf32> -> vector<16x64xf32>
    %cst_22 = arith.constant dense<0.000000e+00> : vector<32x64xf32>
    %191 = tpu.matmul %26, %190, %cst_22 {dimension_numbers = #tpu.dot_dimension_numbers<[1], [0], [0], [1], [0, 0, 1, 1], [], []>} : vector<32x16xf32>, vector<16x64xf32>, vector<32x64xf32> -> vector<32x64xf32>
    %192 = vector.extract_strided_slice %187 {offsets = [0, 0], sizes = [16, 32], strides = [1, 1]} : vector<32x32xf32> to vector<16x32xf32>
    %193 = vector.extract_strided_slice %191 {offsets = [0, 0], sizes = [16, 32], strides = [1, 1]} : vector<32x64xf32> to vector<16x32xf32>
    %194 = vector.extract_strided_slice %191 {offsets = [16, 0], sizes = [16, 32], strides = [1, 1]} : vector<32x64xf32> to vector<16x32xf32>
    %195 = tpu.concatenate %192, %193, %194 in 1 : vector<16x32xf32>, vector<16x32xf32>, vector<16x32xf32> -> vector<16x96xf32>
    %196 = vector.extract_strided_slice %187 {offsets = [16, 0], sizes = [16, 32], strides = [1, 1]} : vector<32x32xf32> to vector<16x32xf32>
    %197 = vector.extract_strided_slice %191 {offsets = [0, 32], sizes = [16, 32], strides = [1, 1]} : vector<32x64xf32> to vector<16x32xf32>
    %198 = vector.extract_strided_slice %191 {offsets = [16, 32], sizes = [16, 32], strides = [1, 1]} : vector<32x64xf32> to vector<16x32xf32>
    %199 = tpu.concatenate %196, %197, %198 in 1 : vector<16x32xf32>, vector<16x32xf32>, vector<16x32xf32> -> vector<16x96xf32>
    %200 = tpu.concatenate %195, %199 in 0 : vector<16x96xf32>, vector<16x96xf32> -> vector<32x96xf32>
    %c0_23 = arith.constant 0 : index
    %c0_24 = arith.constant 0 : index
    %201 = vector.load %arg5[%c0_23, %c0_24] : memref<96x256xf32, #tpu.memory_space<vmem>>, vector<96x256xf32>
    %cst_25 = arith.constant dense<0.000000e+00> : vector<32x256xf32>
    %202 = tpu.matmul %200, %201, %cst_25 {dimension_numbers = #tpu.dot_dimension_numbers<[1], [0], [0], [1], [0, 0, 1, 1], [], []>} : vector<32x96xf32>, vector<96x256xf32>, vector<32x256xf32> -> vector<32x256xf32>
    %203 = vector.extract_strided_slice %27 {offsets = [0, 0], sizes = [32, 1], strides = [1, 1]} : vector<32x8xf32> to vector<32x1xf32>
    %204 = vector.extract_strided_slice %202 {offsets = [0, 0], sizes = [32, 32], strides = [1, 1]} : vector<32x256xf32> to vector<32x32xf32>
    %205 = vector.broadcast %203 : vector<32x1xf32> to vector<32x32xf32>
    %206 = arith.mulf %205, %204 : vector<32x32xf32>
    %207 = vector.extract_strided_slice %27 {offsets = [0, 1], sizes = [32, 1], strides = [1, 1]} : vector<32x8xf32> to vector<32x1xf32>
    %208 = vector.extract_strided_slice %202 {offsets = [0, 32], sizes = [32, 32], strides = [1, 1]} : vector<32x256xf32> to vector<32x32xf32>
    %209 = vector.broadcast %207 : vector<32x1xf32> to vector<32x32xf32>
    %210 = arith.mulf %209, %208 : vector<32x32xf32>
    %211 = arith.addf %206, %210 : vector<32x32xf32>
    %212 = vector.extract_strided_slice %27 {offsets = [0, 2], sizes = [32, 1], strides = [1, 1]} : vector<32x8xf32> to vector<32x1xf32>
    %213 = vector.extract_strided_slice %202 {offsets = [0, 64], sizes = [32, 32], strides = [1, 1]} : vector<32x256xf32> to vector<32x32xf32>
    %214 = vector.broadcast %212 : vector<32x1xf32> to vector<32x32xf32>
    %215 = arith.mulf %214, %213 : vector<32x32xf32>
    %216 = arith.addf %211, %215 : vector<32x32xf32>
    %217 = vector.extract_strided_slice %27 {offsets = [0, 3], sizes = [32, 1], strides = [1, 1]} : vector<32x8xf32> to vector<32x1xf32>
    %218 = vector.extract_strided_slice %202 {offsets = [0, 96], sizes = [32, 32], strides = [1, 1]} : vector<32x256xf32> to vector<32x32xf32>
    %219 = vector.broadcast %217 : vector<32x1xf32> to vector<32x32xf32>
    %220 = arith.mulf %219, %218 : vector<32x32xf32>
    %221 = arith.addf %216, %220 : vector<32x32xf32>
    %222 = vector.extract_strided_slice %27 {offsets = [0, 4], sizes = [32, 1], strides = [1, 1]} : vector<32x8xf32> to vector<32x1xf32>
    %223 = vector.extract_strided_slice %202 {offsets = [0, 128], sizes = [32, 32], strides = [1, 1]} : vector<32x256xf32> to vector<32x32xf32>
    %224 = vector.broadcast %222 : vector<32x1xf32> to vector<32x32xf32>
    %225 = arith.mulf %224, %223 : vector<32x32xf32>
    %226 = arith.addf %221, %225 : vector<32x32xf32>
    %227 = vector.extract_strided_slice %27 {offsets = [0, 5], sizes = [32, 1], strides = [1, 1]} : vector<32x8xf32> to vector<32x1xf32>
    %228 = vector.extract_strided_slice %202 {offsets = [0, 160], sizes = [32, 32], strides = [1, 1]} : vector<32x256xf32> to vector<32x32xf32>
    %229 = vector.broadcast %227 : vector<32x1xf32> to vector<32x32xf32>
    %230 = arith.mulf %229, %228 : vector<32x32xf32>
    %231 = arith.addf %226, %230 : vector<32x32xf32>
    %232 = vector.extract_strided_slice %27 {offsets = [0, 6], sizes = [32, 1], strides = [1, 1]} : vector<32x8xf32> to vector<32x1xf32>
    %233 = vector.extract_strided_slice %202 {offsets = [0, 192], sizes = [32, 32], strides = [1, 1]} : vector<32x256xf32> to vector<32x32xf32>
    %234 = vector.broadcast %232 : vector<32x1xf32> to vector<32x32xf32>
    %235 = arith.mulf %234, %233 : vector<32x32xf32>
    %236 = arith.addf %231, %235 : vector<32x32xf32>
    %237 = vector.extract_strided_slice %27 {offsets = [0, 7], sizes = [32, 1], strides = [1, 1]} : vector<32x8xf32> to vector<32x1xf32>
    %238 = vector.extract_strided_slice %202 {offsets = [0, 224], sizes = [32, 32], strides = [1, 1]} : vector<32x256xf32> to vector<32x32xf32>
    %239 = vector.broadcast %237 : vector<32x1xf32> to vector<32x32xf32>
    %240 = arith.mulf %239, %238 : vector<32x32xf32>
    %241 = arith.addf %236, %240 : vector<32x32xf32>
    %242 = arith.addf %122, %241 : vector<32x32xf32>
    %243 = vector.extract_strided_slice %29 {offsets = [0, 64], sizes = [32, 32], strides = [1, 1]} : vector<32x96xf32> to vector<32x32xf32>
    %244 = arith.addf %242, %243 : vector<32x32xf32>
    %245 = math.tanh %244 : vector<32x32xf32>
    %246 = arith.mulf %186, %1 : vector<32x32xf32>
    %cst_26 = arith.constant 1.000000e+00 : f32
    %247 = vector.broadcast %cst_26 : f32 to vector<32x32xf32>
    %248 = arith.subf %247, %186 : vector<32x32xf32>
    %249 = arith.mulf %248, %245 : vector<32x32xf32>
    %250 = arith.addf %246, %249 : vector<32x32xf32>
    %c0_27 = arith.constant 0 : index
    %c0_28 = arith.constant 0 : index
    %251 = vector.load %arg7[%c0_27, %c0_28] : memref<32x32xf32, #tpu.memory_space<vmem>>, vector<32x32xf32>
    tpu.vector_store %arg7[%c0_27, %c0_28], %250 {strides = array<i32>} : memref<32x32xf32, #tpu.memory_space<vmem>>, vector<32x32xf32>,
    return
  }
}

</mosaic_0001>

<bundles_post_ra>
// kernel: agcrn_cell.1
= control target key start
LH: loop header
LB: loop body
LE: loop exit
PB: predicated region body
PF: predicated region fallthrough
CT: control target
= control target key end

     0   :  { %vm37_vm0 = vcmask 64512   ;;  %s3061_s0 = inlined_call_operand.vmem [shape: f32[32,4], index: 0, kind: input, shape index: {}]   ;;  %s3062_s1 = inlined_call_operand.vmem [shape: f32[32,32], index: 1, kind: input, shape index: {}]   ;;  %s3063_s2 = inlined_call_operand.vmem [shape: f32[16,8], index: 2, kind: input, shape index: {}]   ;;  %s3064_s3 = inlined_call_operand.vmem [shape: f32[12,768], index: 3, kind: input, shape index: {}]   ;;  %s3065_s4 = inlined_call_operand.vmem [shape: f32[96,512], index: 4, kind: input, shape index: {}]   ;;  %s3066_s5 = inlined_call_operand.vmem [shape: f32[96,256], index: 5, kind: input, shape index: {}]   ;;  %s3067_s6 = inlined_call_operand.vmem [shape: f32[8,96], index: 6, kind: input, shape index: {}]   ;;  %s3068_s7 = inlined_call_operand.hbm [shape: f32[32,32], index: 7, kind: output, shape index: {}]  }
   0x1   :  { %v1932_v0 = vld [vmem:[%s3063_s2 + $0x8] sm:$0xff] }
   0x2   :  { %12 = vsyncpa [#allocation3], 0  ;;  %1769 = vmatpush.xpose.msk.msra.mxu2 %vm37_vm0, %v1932_v0  ;;  %1687 = vmatpush.xpose.msk.msra.mxu0 %vm37_vm0, %v1932_v0  ;;  %v1941_v1 = vld [vmem:[%s3063_s2] sm:$0xff]  ;;  %v1954_v2 = vld [vmem:[%s3061_s0 + $0x10] sm:$0xff]  ;;  %s1873_s8 = smov 4   ;;  %vm73_vm1 = vcmask 130048   ;;  %v90_v34 = vlaneseq }
   0x3   :  { %v1959_v3 = vld [vmem:[%s3061_s0 + $0x18] sm:$0xff]  ;;  %v1973_v28 = vld [vmem:[%s3061_s0 + $0x8] sm:$0xff]  ;;  %vm172_vm2 = vcmask 31744   ;;  %v1980_v31 = vld [vmem:[%s3061_s0] sm:$0xff]  ;;  %v1874_v37 = vmov 0.0   ;;  %vm265_vm5 = vcmask 1043456  }
   0x4   :  { %v1789_v4 = vpack.i.bf16 %v1954_v2, %v1959_v3  ;;  %v91_v35 = vshrl.u32 %v90_v34, 7  ;;  %v94_v36 = vand.u32 127, %v90_v34  ;;  %v134_v49 = vld [vmem:[%s3067_s6] sm:$0xff]  ;;  %v246_v50 = vld [vmem:[%s3064_s3 + $0x30] sm:$0xf]  ;;  %s1875_s6 = smov 8  }
   0x5   :  { %v247_v51 = vld [vmem:[%s3064_s3 + $0x38] sm:$0xf]  ;;  %v248_v52 = vld [vmem:[%s3064_s3 + $0x40] sm:$0xf]  ;;  %v249_v53 = vld [vmem:[%s3064_s3 + $0x48] sm:$0xf] }
   0x6   :  { %1770 = vmatpush.xpose.msk.msra.mxu2 %vm37_vm0, %v1941_v1  ;;  %1688 = vmatpush.xpose.msk.msra.mxu0 %vm37_vm0, %v1941_v1  ;;  %vm95_vm3 = vcmp.eq.s32.totalorder %v91_v35, %v94_v36  ;;  %v92_v41 = vadd.s32 8, %v91_v35  ;;  %v2038_v55 = vld [vmem:[%s3062_s1 + $0x18] sm:$0xff]  ;;  %s1876_s24 = smov 32   ;;  %v2053_v57 = vld [vmem:[%s3062_s1 + $0x10] sm:$0xff]  ;;  %v240_v58 = vld [vmem:[%s3064_s3] sm:$0xff]  ;;  %vm252_vm6 = vcmask 97280  }
   0x7   :  { %1790 = vrot.lane.b32.xlu1 %v1789_v4, %s1873_s8  ;;  %v1691_v38 = vsel %vm95_vm3, 1.0, %v1874_v37  ;;  %v241_v59 = vld [vmem:[%s3064_s3 + $0x8] sm:$0xff]  ;;  %v242_v60 = vld [vmem:[%s3064_s3 + $0x10] sm:$0xff]  ;;  %v243_v61 = vld [vmem:[%s3064_s3 + $0x18] sm:$0xff]  ;;  %vm810_vm7 = vcmask 261120   ;;  %v1877_v34 = vmov 3  }
   0x8   :  { %vm96_vm4 = vcmp.eq.s32.totalorder %v92_v41, %v94_v36  ;;  %1796 = vset.pattern.permute.xlu0 %v1877_v34  ;;  %v1878_v35 = vmov 1   ;;  %v1881_v41 = vmov 7   ;;  %vm860_vm8 = vcmask 523264   ;;  %s1675_s27 = sshll.u32 %s3068_s7, 4  ;;  %s1676_s27 = int_to_ptr.hbm [resolvable:$true] %s1675_s27 }
   0x9   :  { %1690 = vmatmul.msk.f32.vlgmr.msra.gmra.mxu2 %vm37_vm0, %v1932_v0  ;;  %1689 = vmatmul.msk.f32.vlgmr.msra.gmra.mxu0 %vm37_vm0, %v1941_v1  ;;  %v1692_v45 = vsel %vm96_vm4, 1.0, %v1874_v37  ;;  %vm921_vm9 = vcmask 785408  }
   0xa   :  { %150 = vmatpush.msrb.mxu2 %v134_v49  ;;  %1708 = vmatpush.msk.msrb.mxu0 %vm265_vm5, %v247_v51  ;;  %v913_v49 = vld [vmem:[%s3065_s4 + $0x140] sm:$0xff]  ;;  %v915_v51 = vld [vmem:[%s3065_s4 + $0x150] sm:$0xff] }
   0xb   :  { %1795 = vset.pattern.permute.xlu2 %v1878_v35  ;;  %1794 = vset.pattern.permute.xlu1 %v1878_v35  ;;  %v888_v35 = vld [vmem:[%s3065_s4 + $0x78] sm:$0xff] }
   0xc   :  { %1713 = vmatpush.msk.msra.mxu2 %vm265_vm5, %v248_v52  ;;  %328 = vmatpush.msrb.mxu0 %v241_v59  ;;  %v916_v52 = vld [vmem:[%s3065_s4 + $0x158] sm:$0xff]  ;;  %v905_v59 = vld [vmem:[%s3065_s4 + $0x100] sm:$0xff] }
   0xe   :  { %357 = vmatpush.msra.mxu2 %v242_v60  ;;  %v906_v60 = vld [vmem:[%s3065_s4 + $0x108] sm:$0xff] }
  0x11   :  { %1695 = vmatmul.msk.f32.vlgmr.msrb.gmra.mxu2 %vm37_vm0, %v1941_v1 }
  0x19   :  { %1696 = vmatmul.msk.f32.gmra.mxu2 %vm37_vm0, %v1932_v0 }
  0x21   :  { %1697 = vmatmul.msk.f32.gmra.mxu2 %vm37_vm0, %v1941_v1 }
  0x29   :  { %1698 = vmatmul.msk.f32.gmra.mxu2 %vm37_vm0, %v1932_v0 }
  0x79   :  { %v1791_v24 = vpop.permute.xlu1 %1790 }
  0x7a   :  { %v1792_v26 = vunpack.i.l.bf16 %v1791_v24  ;;  %v1793_v29 = vunpack.i.h.bf16 %v1791_v24 }
  0x7c   :  { %v174_v32 = vsel %vm172_vm2, %v1973_v28, %v1792_v26  ;;  %v173_v33 = vsel %vm172_vm2, %v1980_v31, %v1793_v29 }
  0x86   :  { %v61_v5 = vpop.f32.mrf.mxu0 }
  0x87   :  { %v67_v8 = vmax.f32 %v61_v5, 0.0 }
  0x89   :  { %v69_v10 = vmul.f32 1.442695, %v67_v8  ;;  %v251_v8 = vld [vmem:[%s3064_s3 + $0x58] sm:$0xf] }
  0x8a   :  { %1728 = vmatpush.msk.msra.mxu0 %vm265_vm5, %v251_v8  ;;  %v897_v8 = vld [vmem:[%s3065_s4 + $0xc0] sm:$0xff] }
  0x8c   :  { %v64_v6 = vpop.f32.mrf.mxu2 }
  0x8d   :  { %v68_v7 = vmax.f32 %v64_v6, 0.0 }
  0x8f   :  { %v71_v9 = vmul.f32 1.442695, %v68_v7  ;;  %v250_v7 = vld [vmem:[%s3064_s3 + $0x50] sm:$0xf] }
  0x91   :  { %1812 = vpow2.f32 %v71_v9  ;;  %v244_v9 = vld [vmem:[%s3064_s3 + $0x20] sm:$0xff] }
  0x92   :  { %1814 = vpow2.f32 %v69_v10  ;;  %v245_v10 = vld [vmem:[%s3064_s3 + $0x28] sm:$0xff]  ;;  %s1879_s3 = smov 64  }
  0x93   :  { %444 = vmatpush.msra.mxu0 %v245_v10  ;;  %v899_v10 = vld [vmem:[%s3065_s4 + $0xd0] sm:$0xff] }
  0x97   :  { %v1813_v11 = vpop.eup %1812 }
  0x98   :  { %v77_v12 = vsel %vm73_vm1, %v1813_v11, 0.0  ;;  %v1815_v13 = vpop.eup %1814 }
  0x99   :  { %78 = vadd.xlane.f32.xlu0 %v77_v12  ;;  %v74_v14 = vsel %vm73_vm1, %v1815_v13, 0.0 }
  0xa1   :  { %75 = vadd.xlane.f32.xlu0 %v74_v14 }
 0x10c   :  { %v79_v15 = vpop.xlane.xlu0 %78 }
 0x10d   :  { %1816 = vrcp.f32 %v79_v15 }
 0x113   :  { %v1817_v16 = vpop.eup %1816 }
 0x114   :  { %v83_v17 = vmul.f32 %v1817_v16, %v79_v15  ;;  %v76_v18 = vpop.xlane.xlu0 %75 }
 0x115   :  { %1818 = vrcp.f32 %v76_v18 }
 0x116   :  { %v85_v19 = vsub.f32 2.0, %v83_v17  ;;  %v2102_v17 = vld [vmem:[%s3062_s1] sm:$0xff] }
 0x118   :  { %v87_v20 = vmul.f32 %v1817_v16, %v85_v19 }
 0x11a   :  { %v1966_v21 = vmul.f32 %v1813_v11, %v87_v20 }
 0x11b   :  { %v1819_v22 = vpop.eup %1818 }
 0x11c   :  { %3102 = vst [vmem:[#allocation5_spill] sm:$0xff] %v1966_v21  ;;  %v82_v23 = vmul.f32 %v1819_v22, %v76_v18  ;;  %121 = vmatpush.msra.mxu1 %v1966_v21  ;;  %1771 = vmatpush.msra.mxu3 %v1966_v21 }
 0x11e   :  { %v84_v25 = vsub.f32 2.0, %v82_v23 }
 0x120   :  { %v86_v27 = vmul.f32 %v1819_v22, %v84_v25 }
 0x122   :  { %v1975_v30 = vmul.f32 %v1815_v13, %v86_v27  ;;  %v2093_v13 = vld [vmem:[%s3062_s1 + $0x8] sm:$0xff] }
 0x124   :  { %3103 = vst [vmem:[#allocation6_spill] sm:$0xff] %v1975_v30  ;;  %122 = vmatpush.msra.mxu1 %v1975_v30  ;;  %1772 = vmatpush.msra.mxu3 %v1975_v30 }
 0x125   :  { %1693 = vmatmul.msk.f32.vlgmr.msra.gmra.mxu1 %vm73_vm1, %v1975_v30  ;;  %1694 = vmatmul.msk.f32.vlgmr.msra.gmra.mxu3 %vm73_vm1, %v1966_v21 }
 0x126   :  { %195 = vmatpush.msrb.mxu3 %v174_v32  ;;  %1703 = vmatpush.msk.msrb.mxu1 %vm265_vm5, %v246_v50  ;;  %v914_v50 = vld [vmem:[%s3065_s4 + $0x148] sm:$0xff] }
 0x128   :  { %196 = vmatpush.msrb.mxu3 %v173_v33  ;;  %299 = vmatpush.msrb.mxu1 %v240_v58  ;;  %v912_v58 = vld [vmem:[%s3065_s4 + $0x138] sm:$0xff] }
 0x12a   :  { %1718 = vmatpush.msk.msra.mxu3 %vm265_vm5, %v249_v53  ;;  %1723 = vmatpush.msk.msra.mxu1 %vm265_vm5, %v250_v7  ;;  %v909_v53 = vld [vmem:[%s3065_s4 + $0x120] sm:$0xff]  ;;  %v904_v7 = vld [vmem:[%s3065_s4 + $0xf8] sm:$0xff] }
 0x12c   :  { %386 = vmatpush.msra.mxu3 %v243_v61  ;;  %415 = vmatpush.msra.mxu1 %v244_v9  ;;  %v1883_v61 = vmov 2   ;;  %v898_v9 = vld [vmem:[%s3065_s4 + $0xc8] sm:$0xff] }
 0x12d   :  { %1699 = vmatmul.msk.f32.vlgmr.msrb.gmra.mxu3 %vm73_vm1, %v1975_v30 }
 0x135   :  { %1700 = vmatmul.msk.f32.gmra.mxu3 %vm73_vm1, %v1966_v21 }
 0x1a2   :  { %v124_v39 = vpop.f32.mrf.mxu1 }
 0x1a3   :  { %v130_v40 = vmul.f32 2.0, %v124_v39 }
 0x1a5   :  { %v1996_v42 = vsub.f32 %v130_v40, %v1691_v38  ;;  %v1880_v40 = vmov 5  }
 0x1a7   :  { %3104 = vst [vmem:[#allocation7_spill] sm:$0xff] %v1996_v42  ;;  %1701 = vmatmul.msk.f32.gmra.mxu3 %vm73_vm1, %v1996_v42 }
 0x1a8   :  { %v127_v43 = vpop.f32.mrf.mxu3 }
 0x1a9   :  { %v131_v44 = vmul.f32 2.0, %v127_v43  ;;  %v1882_v43 = vmov 0  }
 0x1ab   :  { %v2000_v46 = vsub.f32 %v131_v44, %v1692_v45  ;;  %v917_v44 = vld [vmem:[%s3065_s4 + $0x160] sm:$0xff]  ;;  %v918_v45 = vld [vmem:[%s3065_s4 + $0x168] sm:$0xff] }
 0x1ac   :  { %938 = vmatpush.msrb.mxu3 %v917_v44  ;;  %v878_v44 = vld [vmem:[%s3065_s4 + $0x28] sm:$0xff] }
 0x1ad   :  { %3105 = vst [vmem:[#allocation8_spill] sm:$0xff] %v2000_v46 }
 0x1ae   :  { %939 = vmatpush.msrb.mxu3 %v913_v49  ;;  %v873_v49 = vld [vmem:[%s3065_s4] sm:$0xff] }
 0x1af   :  { %1702 = vmatmul.msk.f32.gmra.mxu3 %vm73_vm1, %v2000_v46 }
 0x1b0   :  { %v2004_v47 = vpop.f32.mrf.mxu3  ;;  %940 = vmatpush.msrb.mxu3 %v909_v53  ;;  %v1885_v53 = vmov 6  }
 0x1b1   :  { %212 = vrot.lane.b32.xlu1 %v2004_v47, %s1873_s8  ;;  %v236_v23 = vsel %vm172_vm2, %v1954_v2, %v2004_v47  ;;  %v2149_v2 = vpop.f32.mrf.mxu2  ;;  %v919_v47 = vld [vmem:[%s3065_s4 + $0x170] sm:$0xff] }
 0x1b2   :  { %3108 = vst [vmem:[#allocation11_spill] sm:$0xff] %v2149_v2  ;;  %941 = vmatpush.msrb.mxu3 %v905_v59 }
 0x1b8   :  { %v2008_v48 = vpop.f32.mrf.mxu3 }
 0x1b9   :  { %v237_v25 = vsel %vm172_vm2, %v1959_v3, %v2008_v48  ;;  %v2151_v3 = vpop.f32.mrf.mxu2 }
 0x1ba   :  { %3109 = vst [vmem:[#allocation12_spill] sm:$0xff] %v2151_v3 }
 0x1c1   :  { %v2153_v27 = vpop.f32.mrf.mxu2 }
 0x223   :  { %v213_v62 = vpop.permute.xlu1 %212 }
 0x224   :  { %v226_v63 = vsel %vm172_vm2, %v1980_v31, %v213_v62  ;;  %v907_v62 = vld [vmem:[%s3065_s4 + $0x110] sm:$0xff] }
 0x22a   :  { %v204_v54 = vpop.f32.mrf.mxu3 }
 0x22b   :  { %230 = vrot.lane.b32.xlu1 %v204_v54, %s1873_s8  ;;  %220 = vrot.lane.b32.xlu2 %v204_v54, %s1875_s6  ;;  %v910_v54 = vld [vmem:[%s3065_s4 + $0x128] sm:$0xff] }
 0x232   :  { %v207_v56 = vpop.f32.mrf.mxu3 }
 0x233   :  { %214 = vrot.lane.b32.xlu2 %v2008_v48, %s1873_s8  ;;  %222 = vrot.lane.b32.xlu0 %v207_v56, %s1875_s6  ;;  %v920_v48 = vld [vmem:[%s3065_s4 + $0x178] sm:$0xff] }
 0x234   :  { %806 = vrot.lane.b32.xlu1 %v2038_v55, %s1876_s24 }
 0x23b   :  { %232 = vrot.lane.b32.xlu2 %v207_v56, %s1873_s8  ;;  %v911_v56 = vld [vmem:[%s3065_s4 + $0x130] sm:$0xff] }
 0x243   :  { %804 = vrot.lane.b32.xlu2 %v2053_v57, %s1876_s24 }
 0x285   :  { %v221_v4 = vpop.permute.xlu2 %220 }
 0x286   :  { %v228_v5 = vsel %vm37_vm0, %v226_v63, %v221_v4  ;;  %v908_v63 = vld [vmem:[%s3065_s4 + $0x118] sm:$0xff]  ;;  %v901_v4 = vld [vmem:[%s3065_s4 + $0xe0] sm:$0xff] }
 0x287   :  { %1704 = vmatmul.msk.f32.vlgmr.msrb.gmra.mxu1 %vm252_vm6, %v228_v5  ;;  %1709 = vmatmul.msk.f32.vlgmr.msrb.gmra.mxu0 %vm252_vm6, %v228_v5 }
 0x288   :  { %1714 = vmatmul.msk.f32.vlgmr.msra.gmra.mxu2 %vm252_vm6, %v228_v5  ;;  %1719 = vmatmul.msk.f32.vlgmr.msra.gmra.mxu3 %vm252_vm6, %v228_v5 }
 0x289   :  { %967 = vmatpush.msrb.mxu1 %v918_v45  ;;  %996 = vmatpush.msrb.mxu0 %v919_v47  ;;  %v879_v45 = vld [vmem:[%s3065_s4 + $0x30] sm:$0xff]  ;;  %v880_v47 = vld [vmem:[%s3065_s4 + $0x38] sm:$0xff] }
 0x28a   :  { %942 = vmatpush.msrb.mxu3 %v901_v4 }
 0x28b   :  { %968 = vmatpush.msrb.mxu1 %v914_v50  ;;  %997 = vmatpush.msrb.mxu0 %v915_v51  ;;  %v874_v50 = vld [vmem:[%s3065_s4 + $0x8] sm:$0xff]  ;;  %v875_v51 = vld [vmem:[%s3065_s4 + $0x10] sm:$0xff] }
 0x28c   :  { %943 = vmatpush.msrb.mxu3 %v897_v8 }
 0x28d   :  { %v215_v6 = vpop.permute.xlu2 %214  ;;  %969 = vmatpush.msrb.mxu1 %v910_v54  ;;  %998 = vmatpush.msrb.mxu0 %v911_v56 }
 0x28e   :  { %v227_v14 = vsel %vm172_vm2, %v1973_v28, %v215_v6  ;;  %v2155_v28 = vpop.f32.mrf.mxu2  ;;  %v903_v6 = vld [vmem:[%s3065_s4 + $0xf0] sm:$0xff] }
 0x28f   :  { %970 = vmatpush.msrb.mxu1 %v906_v60  ;;  %999 = vmatpush.msrb.mxu0 %v907_v62 }
 0x291   :  { %1000 = vmatpush.msrb.mxu0 %v903_v6 }
 0x293   :  { %1001 = vmatpush.msrb.mxu0 %v899_v10 }
 0x295   :  { %v233_v11 = vpop.permute.xlu2 %232 }
 0x296   :  { %v239_v26 = vsel %vm37_vm0, %v237_v25, %v233_v11  ;;  %v900_v11 = vld [vmem:[%s3065_s4 + $0xd8] sm:$0xff]  ;;  %v885_v25 = vld [vmem:[%s3065_s4 + $0x60] sm:$0xff] }
 0x29d   :  { %v231_v12 = vpop.permute.xlu1 %230  ;;  %v2097_v16 = vpop.permute.xlu2 %804 }
 0x29e   :  { %3106 = vst [vmem:[#allocation9_spill] sm:$0xff] %v2097_v16  ;;  %v811_v22 = vsel %vm810_vm7, %v2102_v17, %v2097_v16  ;;  %v238_v24 = vsel %vm37_vm0, %v236_v23, %v231_v12  ;;  %v893_v12 = vld [vmem:[%s3065_s4 + $0xa0] sm:$0xff]  ;;  %v891_v23 = vld [vmem:[%s3065_s4 + $0x90] sm:$0xff] }
 0x29f   :  { %944 = vmatpush.msrb.mxu3 %v893_v12 }
 0x2a5   :  { %v223_v15 = vpop.permute.xlu0 %222 }
 0x2a6   :  { %v229_v18 = vsel %vm37_vm0, %v227_v14, %v223_v15  ;;  %v2105_v19 = vpop.permute.xlu1 %806  ;;  %v894_v14 = vld [vmem:[%s3065_s4 + $0xa8] sm:$0xff]  ;;  %v895_v15 = vld [vmem:[%s3065_s4 + $0xb0] sm:$0xff] }
 0x2a7   :  { %3107 = vst [vmem:[#allocation10_spill] sm:$0xff] %v2105_v19  ;;  %1705 = vmatmul.msk.f32.gmra.mxu1 %vm252_vm6, %v229_v18  ;;  %1710 = vmatmul.msk.f32.gmra.mxu0 %vm252_vm6, %v229_v18  ;;  %v812_v20 = vsel %vm810_vm7, %v2093_v13, %v2105_v19 }
 0x2a8   :  { %1715 = vmatmul.msk.f32.gmra.mxu2 %vm252_vm6, %v229_v18  ;;  %1720 = vmatmul.msk.f32.gmra.mxu3 %vm252_vm6, %v229_v18 }
 0x2a9   :  { %827 = vmatpush.msrb.mxu2 %v812_v20  ;;  %v889_v20 = vld [vmem:[%s3065_s4 + $0x80] sm:$0xff]  ;;  %1002 = vmatpush.msrb.mxu0 %v895_v15 }
 0x2aa   :  { %945 = vmatpush.msrb.mxu3 %v889_v20 }
 0x2ab   :  { %828 = vmatpush.msrb.mxu2 %v811_v22  ;;  %v890_v22 = vld [vmem:[%s3065_s4 + $0x88] sm:$0xff]  ;;  %1003 = vmatpush.msrb.mxu0 %v891_v23 }
 0x2ac   :  { %946 = vmatpush.msrb.mxu3 %v885_v25 }
 0x2ad   :  { %1025 = vmatpush.msra.mxu2 %v920_v48  ;;  %v1884_v48 = vmov 4  }
 0x2af   :  { %1706 = vmatmul.msk.f32.gmra.mxu1 %vm252_vm6, %v238_v24  ;;  %1711 = vmatmul.msk.f32.gmra.mxu0 %vm252_vm6, %v238_v24 }
 0x2b0   :  { %1716 = vmatmul.msk.f32.gmra.mxu2 %vm252_vm6, %v238_v24  ;;  %1721 = vmatmul.msk.f32.gmra.mxu3 %vm252_vm6, %v238_v24 }
 0x2b1   :  { %1026 = vmatpush.msra.mxu2 %v916_v52  ;;  %v876_v52 = vld [vmem:[%s3065_s4 + $0x18] sm:$0xff] }
 0x2b3   :  { %1027 = vmatpush.msra.mxu2 %v912_v58 }
 0x2b5   :  { %1028 = vmatpush.msra.mxu2 %v908_v63 }
 0x2b7   :  { %1707 = vmatmul.msk.f32.gmra.mxu1 %vm252_vm6, %v239_v26  ;;  %1712 = vmatmul.msk.f32.gmra.mxu0 %vm252_vm6, %v239_v26 }
 0x2b8   :  { %1717 = vmatmul.msk.f32.gmra.mxu2 %vm252_vm6, %v239_v26  ;;  %1722 = vmatmul.msk.f32.gmra.mxu3 %vm252_vm6, %v239_v26 }
 0x2b9   :  { %1029 = vmatpush.msra.mxu2 %v904_v7 }
 0x2bb   :  { %1030 = vmatpush.msra.mxu2 %v900_v11 }
 0x2bf   :  { %1724 = vmatmul.msk.f32.vlgmr.msra.gmra.mxu1 %vm252_vm6, %v228_v5  ;;  %1729 = vmatmul.msk.f32.vlgmr.msra.gmra.mxu0 %vm252_vm6, %v228_v5  ;;  %v902_v5 = vld [vmem:[%s3065_s4 + $0xe8] sm:$0xff] }
 0x2c0   :  { %1733 = vmatmul.msk.f32.vlgmr.msrb.gmra.mxu2 %vm73_vm1, %v1975_v30  ;;  %971 = vmatpush.msrb.mxu1 %v902_v5 }
 0x2c2   :  { %972 = vmatpush.msrb.mxu1 %v898_v9 }
 0x2c4   :  { %973 = vmatpush.msrb.mxu1 %v894_v14 }
 0x2c6   :  { %974 = vmatpush.msrb.mxu1 %v890_v22 }
 0x2c7   :  { %1725 = vmatmul.msk.f32.gmra.mxu1 %vm252_vm6, %v229_v18  ;;  %1730 = vmatmul.msk.f32.gmra.mxu0 %vm252_vm6, %v229_v18  ;;  %v896_v18 = vld [vmem:[%s3065_s4 + $0xb8] sm:$0xff] }
 0x2c8   :  { %1734 = vmatmul.msk.f32.gmra.mxu2 %vm73_vm1, %v1966_v21 }
 0x2c9   :  { %1031 = vmatpush.msra.mxu2 %v896_v18 }
 0x2cf   :  { %1726 = vmatmul.msk.f32.gmra.mxu1 %vm252_vm6, %v238_v24  ;;  %1731 = vmatmul.msk.f32.gmra.mxu0 %vm252_vm6, %v238_v24  ;;  %v892_v24 = vld [vmem:[%s3065_s4 + $0x98] sm:$0xff] }
 0x2d0   :  { %1735 = vmatmul.msk.f32.gmra.mxu2 %vm73_vm1, %v1996_v42 }
 0x2d1   :  { %1032 = vmatpush.msra.mxu2 %v892_v24 }
 0x2d3   :  { %1033 = vmatpush.msra.mxu2 %v888_v35 }
 0x2d7   :  { %1727 = vmatmul.msk.f32.gmra.mxu1 %vm252_vm6, %v239_v26  ;;  %1732 = vmatmul.msk.f32.gmra.mxu0 %vm252_vm6, %v239_v26  ;;  %v886_v26 = vld [vmem:[%s3065_s4 + $0x68] sm:$0xff] }
 0x2d8   :  { %1736 = vmatmul.msk.f32.gmra.mxu2 %vm73_vm1, %v2000_v46  ;;  %975 = vmatpush.msrb.mxu1 %v886_v26 }
 0x304   :  { %v2348_v60 = vpop.f32.mrf.mxu0 }
 0x30b   :  { %v2157_v29 = vpop.f32.mrf.mxu2 }
 0x324   :  { %v2359_v5 = vpop.f32.mrf.mxu0 }
 0x32b   :  { %v2159_v31 = vpop.f32.mrf.mxu2 }
 0x32c   :  { %v2376_v12 = vpop.f32.mrf.mxu0 }
 0x333   :  { %v2161_v32 = vpop.f32.mrf.mxu2 }
 0x334   :  { %v2393_v22 = vpop.f32.mrf.mxu0 }
 0x33b   :  { %v2163_v33 = vpop.f32.mrf.mxu2 }
 0x343   :  { %v2165_v36 = vpop.f32.mrf.mxu2 }
 0x344   :  { %844 = vrot.lane.b32.xlu1 %v2165_v36, %s1876_s24 }
 0x34b   :  { %v2169_v37 = vpop.f32.mrf.mxu2 }
 0x34c   :  { %846 = vrot.lane.b32.xlu0 %v2169_v37, %s1876_s24  ;;  %v870_v14 = vsel %vm810_vm7, %v2038_v55, %v2169_v37  ;;  %v2398_v37 = vpop.f32.mrf.mxu3 }
 0x353   :  { %v836_v38 = vpop.f32.mrf.mxu2 }
 0x354   :  { %852 = vrot.lane.b32.xlu2 %v836_v38, %s1879_s3  ;;  %v2405_v25 = vpop.f32.mrf.mxu3 }
 0x355   :  { %3114 = vst [vmem:[#allocation17_spill] sm:$0xff] %v2405_v25 }
 0x35b   :  { %v839_v39 = vpop.f32.mrf.mxu2 }
 0x35c   :  { %863 = vrot.lane.b32.xlu2 %v836_v38, %s1876_s24  ;;  %865 = vrot.lane.b32.xlu0 %v839_v39, %s1876_s24  ;;  %v881_v38 = vld [vmem:[%s3065_s4 + $0x40] sm:$0xff]  ;;  %v2412_v35 = vpop.f32.mrf.mxu3 }
 0x35d   :  { %854 = vrot.lane.b32.xlu1 %v839_v39, %s1879_s3  ;;  %v882_v39 = vld [vmem:[%s3065_s4 + $0x48] sm:$0xff]  ;;  %947 = vmatpush.msrb.mxu3 %v881_v38 }
 0x35e   :  { %976 = vmatpush.msrb.mxu1 %v882_v39 }
 0x360   :  { %977 = vmatpush.msrb.mxu1 %v878_v44 }
 0x362   :  { %978 = vmatpush.msrb.mxu1 %v874_v50 }
 0x364   :  { %471 = vperm.xlu2 %1795, %v1941_v1   ;;  %523 = vperm.xlu0 %1796, %v1932_v0  }
 0x365   :  { %475 = vperm.xlu1 %1794, %v1932_v0  }
 0x36c   :  { %1798 = vset.pattern.permute.xlu2 %v1880_v40  ;;  %1801 = vset.pattern.permute.xlu0 %v1881_v41 }
 0x36d   :  { %1797 = vset.pattern.permute.xlu1 %v1877_v34  ;;  %571 = vperm.xlu2 %1798, %v1932_v0   ;;  %v887_v34 = vld [vmem:[%s3065_s4 + $0x70] sm:$0xff] }
 0x36e   :  { %615 = vperm.xlu0 %1801, %v1941_v1   ;;  %519 = vperm.xlu1 %1797, %v1941_v1  }
 0x36f   :  { %1004 = vmatpush.msrb.mxu0 %v887_v34 }
 0x375   :  { %1800 = vset.pattern.permute.xlu2 %v1881_v41  ;;  %v884_v41 = vld [vmem:[%s3065_s4 + $0x58] sm:$0xff] }
 0x376   :  { %1799 = vset.pattern.permute.xlu1 %v1880_v40  ;;  %619 = vperm.xlu2 %1800, %v1932_v0   ;;  %v883_v40 = vld [vmem:[%s3065_s4 + $0x50] sm:$0xff] }
 0x377   :  { %567 = vperm.xlu1 %1799, %v1941_v1   ;;  %1005 = vmatpush.msrb.mxu0 %v883_v40 }
 0x378   :  { %1034 = vmatpush.msra.mxu2 %v884_v41  ;;  %v2421_v41 = vpop.f32.mrf.mxu3 }
 0x379   :  { %1006 = vmatpush.msrb.mxu0 %v879_v45  ;;  %v2428_v45 = vpop.f32.mrf.mxu0 }
 0x37a   :  { %1035 = vmatpush.msra.mxu2 %v880_v47  ;;  %3119 = vst [vmem:[#allocation22_spill] sm:$0xff] %v2428_v45 }
 0x37b   :  { %1007 = vmatpush.msrb.mxu0 %v875_v51 }
 0x37c   :  { %1036 = vmatpush.msra.mxu2 %v876_v52 }
 0x37e   :  { %1803 = vset.pattern.permute.xlu2 %v1882_v43 }
 0x37f   :  { %1802 = vset.pattern.permute.xlu1 %v1882_v43  ;;  %459 = vperm.xlu2 %1803, %v1941_v1   ;;  %v877_v43 = vld [vmem:[%s3065_s4 + $0x20] sm:$0xff] }
 0x380   :  { %463 = vperm.xlu1 %1802, %v1932_v0   ;;  %948 = vmatpush.msrb.mxu3 %v877_v43 }
 0x382   :  { %949 = vmatpush.msrb.mxu3 %v873_v49 }
 0x387   :  { %1804 = vset.pattern.permute.xlu2 %v1883_v61 }
 0x388   :  { %507 = vperm.xlu2 %1804, %v1932_v0  }
 0x390   :  { %503 = vperm.xlu2 %1804, %v1941_v1  }
 0x398   :  { %1805 = vset.pattern.permute.xlu2 %v1884_v48  ;;  %v2432_v48 = vpop.f32.mrf.mxu0 }
 0x399   :  { %555 = vperm.xlu2 %1805, %v1932_v0   ;;  %3121 = vst [vmem:[#allocation24_spill] sm:$0xff] %v2432_v48 }
 0x3a0   :  { %v2436_v50 = vpop.f32.mrf.mxu0 }
 0x3a1   :  { %551 = vperm.xlu2 %1805, %v1941_v1   ;;  %3123 = vst [vmem:[#allocation26_spill] sm:$0xff] %v2436_v50 }
 0x3a9   :  { %1806 = vset.pattern.permute.xlu2 %v1885_v53  ;;  %v2442_v53 = vpop.f32.mrf.mxu0 }
 0x3aa   :  { %603 = vperm.xlu2 %1806, %v1932_v0   ;;  %v2344_v0 = vpop.f32.mrf.mxu1  ;;  %3125 = vst [vmem:[#allocation28_spill] sm:$0xff] %v2442_v53 }
 0x3ae   :  { %v853_v56 = vpop.permute.xlu2 %852 }
 0x3b2   :  { %599 = vperm.xlu2 %1806, %v1941_v1   ;;  %v2346_v1 = vpop.f32.mrf.mxu1 }
 0x3b6   :  { %v845_v54 = vpop.permute.xlu1 %844  ;;  %v864_v6 = vpop.permute.xlu2 %863 }
 0x3b7   :  { %v858_v58 = vsel %vm810_vm7, %v2102_v17, %v845_v54 }
 0x3b8   :  { %v861_v59 = vsel %vm860_vm8, %v858_v58, %v853_v56 }
 0x3b9   :  { %1737 = vmatmul.msk.f32.vlgmr.msrb.gmra.mxu3 %vm921_vm9, %v861_v59  ;;  %1741 = vmatmul.msk.f32.vlgmr.msrb.gmra.mxu1 %vm921_vm9, %v861_v59 }
 0x3ba   :  { %1745 = vmatmul.msk.f32.vlgmr.msrb.gmra.mxu0 %vm921_vm9, %v861_v59  ;;  %1749 = vmatmul.msk.f32.vlgmr.msra.gmra.mxu2 %vm921_vm9, %v861_v59  ;;  %v2350_v62 = vpop.f32.mrf.mxu1 }
 0x3be   :  { %v847_v61 = vpop.permute.xlu0 %846 }
 0x3bf   :  { %v859_v17 = vsel %vm810_vm7, %v2093_v13, %v847_v61  ;;  %v869_v13 = vsel %vm810_vm7, %v2053_v57, %v2165_v36  ;;  %v2378_v36 = vpop.permute.xlu2 %471 }
 0x3c0   :  { %v871_v9 = vsel %vm860_vm8, %v869_v13, %v864_v6  ;;  %3111 = vst [vmem:[#allocation14_spill] sm:$0xff] %v2378_v36  ;;  %v480_v18 = vmul.f32 %v2378_v36, %v2350_v62 }
 0x3c2   :  { %v2361_v7 = vpop.f32.mrf.mxu1 }
 0x3c7   :  { %v2407_v26 = vpop.permute.xlu2 %571 }
 0x3c8   :  { %3115 = vst [vmem:[#allocation18_spill] sm:$0xff] %v2407_v26  ;;  %v577_v34 = vmul.f32 %v2407_v26, %v2163_v33 }
 0x3ca   :  { %v2426_v44 = vpop.f32.mrf.mxu1 }
 0x3cb   :  { %3118 = vst [vmem:[#allocation21_spill] sm:$0xff] %v2426_v44 }
 0x3ce   :  { %v866_v11 = vpop.permute.xlu0 %865 }
 0x3cf   :  { %v855_v63 = vpop.permute.xlu1 %854  ;;  %v872_v15 = vsel %vm860_vm8, %v870_v14, %v866_v11 }
 0x3d0   :  { %v862_v4 = vsel %vm860_vm8, %v859_v17, %v855_v63  ;;  %v2419_v40 = vpop.permute.xlu2 %619 }
 0x3d1   :  { %1738 = vmatmul.msk.f32.gmra.mxu3 %vm921_vm9, %v862_v4  ;;  %1742 = vmatmul.msk.f32.gmra.mxu1 %vm921_vm9, %v862_v4  ;;  %3117 = vst [vmem:[#allocation20_spill] sm:$0xff] %v2419_v40  ;;  %v625_v43 = vmul.f32 %v2419_v40, %v2421_v41 }
 0x3d2   :  { %1746 = vmatmul.msk.f32.gmra.mxu0 %vm921_vm9, %v862_v4  ;;  %1750 = vmatmul.msk.f32.gmra.mxu2 %vm921_vm9, %v862_v4  ;;  %v2430_v47 = vpop.f32.mrf.mxu1 }
 0x3d3   :  { %3120 = vst [vmem:[#allocation23_spill] sm:$0xff] %v2430_v47 }
 0x3d6   :  { %v2391_v20 = vpop.permute.xlu0 %523 }
 0x3d7   :  { %v2366_v8 = vpop.permute.xlu1 %475  ;;  %3112 = vst [vmem:[#allocation15_spill] sm:$0xff] %v2391_v20  ;;  %v529_v55 = vmul.f32 %v2391_v20, %v2393_v22 }
 0x3d8   :  { %3110 = vst [vmem:[#allocation13_spill] sm:$0xff] %v2366_v8  ;;  %v481_v10 = vmul.f32 %v2366_v8, %v2361_v7 }
 0x3d9   :  { %1739 = vmatmul.msk.f32.gmra.mxu3 %vm921_vm9, %v871_v9  ;;  %1743 = vmatmul.msk.f32.gmra.mxu1 %vm921_vm9, %v871_v9 }
 0x3da   :  { %1747 = vmatmul.msk.f32.gmra.mxu0 %vm921_vm9, %v871_v9  ;;  %1751 = vmatmul.msk.f32.gmra.mxu2 %vm921_vm9, %v871_v9  ;;  %v2434_v49 = vpop.f32.mrf.mxu1 }
 0x3db   :  { %492 = vrot.lane.b32.xlu1 %v481_v10, %s1879_s3  ;;  %3122 = vst [vmem:[#allocation25_spill] sm:$0xff] %v2434_v49 }
 0x3e0   :  { %v2400_v23 = vpop.permute.xlu1 %519  ;;  %v2465_v9 = vpop.permute.xlu0 %615 }
 0x3e1   :  { %1740 = vmatmul.msk.f32.gmra.mxu3 %vm921_vm9, %v872_v15  ;;  %1744 = vmatmul.msk.f32.gmra.mxu1 %vm921_vm9, %v872_v15  ;;  %3113 = vst [vmem:[#allocation16_spill] sm:$0xff] %v2400_v23  ;;  %v528_v24 = vmul.f32 %v2400_v23, %v2376_v12 }
 0x3e2   :  { %1748 = vmatmul.msk.f32.gmra.mxu0 %vm921_vm9, %v872_v15  ;;  %1752 = vmatmul.msk.f32.gmra.mxu2 %vm921_vm9, %v872_v15  ;;  %v2438_v51 = vpop.f32.mrf.mxu1  ;;  %3126 = vst [vmem:[#allocation29_spill] sm:$0xff] %v2465_v9 }
 0x3e3   :  { %490 = vrot.lane.b32.xlu1 %v480_v18, %s1879_s3  ;;  %3124 = vst [vmem:[#allocation27_spill] sm:$0xff] %v2438_v51 }
 0x3e9   :  { %v2414_v38 = vpop.permute.xlu1 %567 }
 0x3ea   :  { %3116 = vst [vmem:[#allocation19_spill] sm:$0xff] %v2414_v38  ;;  %v576_v39 = vmul.f32 %v2414_v38, %v2161_v32 }
 0x3eb   :  { %540 = vrot.lane.b32.xlu1 %v529_v55, %s1879_s3 }
 0x3f3   :  { %538 = vrot.lane.b32.xlu1 %v528_v24, %s1879_s3 }
 0x3fb   :  { %588 = vrot.lane.b32.xlu1 %v577_v34, %s1879_s3  ;;  %v478_v34 = vmul.f32 %v2378_v36, %v2344_v0 }
 0x403   :  { %586 = vrot.lane.b32.xlu1 %v576_v39, %s1879_s3 }
 0x40b   :  { %636 = vrot.lane.b32.xlu1 %v625_v43, %s1879_s3 }
 0x436   :  { %v2440_v52 = vpop.f32.mrf.mxu1 }
 0x437   :  { %v2450_v59 = vpop.f32.mrf.mxu0 }
 0x43c   :  { %v2444_v54 = vpop.f32.mrf.mxu3 }
 0x43d   :  { %v2446_v56 = vpop.f32.mrf.mxu2 }
 0x43e   :  { %v1150_v45 = vmul.f32 %v2446_v56, %v2465_v9 }
 0x44e   :  { %v2448_v58 = vpop.f32.mrf.mxu1 }
 0x44f   :  { %v2460_v6 = vpop.f32.mrf.mxu0 }
 0x454   :  { %v2452_v61 = vpop.f32.mrf.mxu3 }
 0x455   :  { %v2454_v17 = vpop.f32.mrf.mxu2 }
 0x456   :  { %v2456_v63 = vpop.f32.mrf.mxu1 }
 0x457   :  { %v1088_v4 = vmul.f32 %v2456_v63, %v2400_v23  ;;  %v2475_v15 = vpop.f32.mrf.mxu0 }
 0x458   :  { %v1120_v19 = vmul.f32 %v2475_v15, %v2414_v38 }
 0x459   :  { %1098 = vrot.lane.b32.xlu0 %v1088_v4, %s1879_s3  ;;  %v1087_v4 = vmul.f32 %v2448_v58, %v2391_v20 }
 0x45c   :  { %v2463_v13 = vpop.f32.mrf.mxu3 }
 0x45d   :  { %v2467_v10 = vpop.f32.mrf.mxu2  ;;  %v1056_v14 = vmul.f32 %v2463_v13, %v2378_v36 }
 0x45e   :  { %v1152_v11 = vmul.f32 %v2467_v10, %v2465_v9  ;;  %v2477_v18 = vpop.f32.mrf.mxu1 }
 0x45f   :  { %v1089_v39 = vmul.f32 %v2477_v18, %v2391_v20  ;;  %v2490_v43 = vpop.f32.mrf.mxu0 }
 0x460   :  { %1162 = vrot.lane.b32.xlu1 %v1152_v11, %s1879_s3  ;;  %v479_v11 = vmul.f32 %v2366_v8, %v2346_v1 }
 0x461   :  { %1066 = vrot.lane.b32.xlu0 %v1056_v14, %s1879_s3  ;;  %v1121_v14 = vmul.f32 %v2490_v43, %v2407_v26 }
 0x465   :  { %v2479_v55 = vpop.f32.mrf.mxu2 }
 0x466   :  { %v1153_v24 = vmul.f32 %v2479_v55, %v2419_v40 }
 0x468   :  { %1164 = vrot.lane.b32.xlu2 %v1153_v24, %s1879_s3  ;;  %486 = vrot.lane.b32.xlu1 %v478_v34, %s1879_s3  ;;  %v2501_v24 = vpop.f32.mrf.mxu3  ;;  %v1054_v34 = vmul.f32 %v2444_v54, %v2378_v36 }
 0x469   :  { %1100 = vrot.lane.b32.xlu0 %v1089_v39, %s1879_s3  ;;  %v575_v39 = vmul.f32 %v2407_v26, %v2159_v31  ;;  %v1057_v16 = vmul.f32 %v2501_v24, %v2366_v8 }
 0x470   :  { %488 = vrot.lane.b32.xlu2 %v479_v11, %s1879_s3  ;;  %1096 = vrot.lane.b32.xlu1 %v1087_v4, %s1879_s3  ;;  %v2512_v4 = vpop.permute.xlu2 %459  ;;  %v1118_v11 = vmul.f32 %v2450_v59, %v2414_v38 }
 0x471   :  { %1132 = vrot.lane.b32.xlu0 %v1121_v14, %s1879_s3  ;;  %v526_v14 = vmul.f32 %v2400_v23, %v2348_v60 }
 0x478   :  { %1062 = vrot.lane.b32.xlu2 %v1054_v34, %s1879_s3  ;;  %584 = vrot.lane.b32.xlu1 %v575_v39, %s1879_s3  ;;  %v622_v34 = vmul.f32 %v2465_v9, %v2398_v37  ;;  %v624_v39 = vmul.f32 %v2465_v9, %v2412_v35  ;;  %v2529_v53 = vpop.permute.xlu2 %507  ;;  %v574_v9 = vmul.f32 %v2414_v38, %v2157_v29 }
 0x479   :  { %1068 = vrot.lane.b32.xlu0 %v1057_v16, %s1879_s3  ;;  %v1119_v16 = vmul.f32 %v2460_v6, %v2407_v26  ;;  %v1052_v38 = vmul.f32 %v2463_v13, %v2512_v4 }
 0x480   :  { %534 = vrot.lane.b32.xlu2 %v526_v14, %s1879_s3  ;;  %1126 = vrot.lane.b32.xlu1 %v1118_v11, %s1879_s3  ;;  %v1055_v11 = vmul.f32 %v2452_v61, %v2366_v8  ;;  %v2540_v14 = vpop.permute.xlu2 %503 }
 0x481   :  { %1130 = vrot.lane.b32.xlu0 %v1120_v19, %s1879_s3  ;;  %v623_v19 = vmul.f32 %v2419_v40, %v2405_v25  ;;  %v1078_v36 = vmul.f32 %v2440_v52, %v2540_v14  ;;  %v1080_v47 = vmul.f32 %v2456_v63, %v2540_v14  ;;  %v468_v63 = vmul.f32 %v2512_v4, %v2350_v62 }
 0x488   :  { %1128 = vrot.lane.b32.xlu2 %v1119_v16, %s1879_s3  ;;  %630 = vrot.lane.b32.xlu1 %v622_v34, %s1879_s3  ;;  %v527_v16 = vmul.f32 %v2391_v20, %v2359_v5  ;;  %v2548_v34 = vpop.permute.xlu2 %555 }
 0x489   :  { %634 = vrot.lane.b32.xlu0 %v624_v39, %s1879_s3  ;;  %v1086_v39 = vmul.f32 %v2440_v52, %v2400_v23  ;;  %v561_v62 = vmul.f32 %v2548_v34, %v2163_v33 }
 0x490   :  { %632 = vrot.lane.b32.xlu2 %v623_v19, %s1879_s3  ;;  %v2553_v19 = vpop.permute.xlu1 %463 }
 0x491   :  { %1064 = vrot.lane.b32.xlu0 %v1055_v11, %s1879_s3  ;;  %v2555_v11 = vpop.permute.xlu2 %551  ;;  %v469_v52 = vmul.f32 %v2553_v19, %v2361_v7  ;;  %v512_v7 = vmul.f32 %v2540_v14, %v2376_v12 }
 0x498   :  { %1158 = vrot.lane.b32.xlu2 %v1150_v45, %s1879_s3  ;;  %v493_v50 = vpop.permute.xlu1 %492  ;;  %v1151_v45 = vmul.f32 %v2454_v17, %v2419_v40 }
 0x499   :  { %536 = vrot.lane.b32.xlu0 %v527_v16, %s1879_s3  ;;  %v2562_v16 = vpop.permute.xlu2 %603 }
 0x4a0   :  { %v491_v26 = vpop.permute.xlu1 %490 }
 0x4a1   :  { %1094 = vrot.lane.b32.xlu0 %v1086_v39, %s1879_s3  ;;  %v2565_v48 = vpop.permute.xlu2 %599 }
 0x4a2   :  { %v1144_v12 = vmul.f32 %v2467_v10, %v2565_v48 }
 0x4a8   :  { %v541_v39 = vpop.permute.xlu1 %540 }
 0x4a9   :  { %582 = vrot.lane.b32.xlu0 %v574_v9, %s1879_s3  ;;  %v1050_v9 = vmul.f32 %v2444_v54, %v2512_v4  ;;  %v1112_v54 = vmul.f32 %v2475_v15, %v2555_v11 }
 0x4b0   :  { %v539_v23 = vpop.permute.xlu1 %538 }
 0x4b1   :  { %1160 = vrot.lane.b32.xlu0 %v1151_v45, %s1879_s3 }
 0x4b8   :  { %v589_v45 = vpop.permute.xlu1 %588 }
 0x4c0   :  { %v587_v3 = vpop.permute.xlu1 %586 }
 0x4c2   :  { %v1165_v20 = vpop.permute.xlu2 %1164 }
 0x4ca   :  { %v2567_v51 = vpop.permute.xlu2 %488 }
 0x4cb   :  { %v1099_v44 = vpop.permute.xlu0 %1098 }
 0x4d2   :  { %v1063_v40 = vpop.permute.xlu2 %1062 }
 0x4d3   :  { %v1074_v49 = vadd.f32 %v1063_v40, %v1050_v9  ;;  %v1067_v8 = vpop.permute.xlu0 %1066  ;;  %v501_v40 = vadd.f32 %v493_v50, %v469_v52  ;;  %v637_v9 = vpop.permute.xlu1 %636 }
 0x4d4   :  { %v1076_v46 = vadd.f32 %v1067_v8, %v1052_v38  ;;  %v513_v8 = vmul.f32 %v2529_v53, %v2393_v22 }
 0x4d5   :  { %v2577_v42 = vadd.f32 %v1078_v36, %v1074_v49 }
 0x4d6   :  { %v1084_v21 = vadd.f32 %v1080_v47, %v1076_v46  ;;  %v500_v46 = vadd.f32 %v491_v26, %v468_v63  ;;  %v517_v36 = vadd.f32 %v513_v8, %v501_v40  ;;  %v1113_v26 = vmul.f32 %v2490_v43, %v2548_v34 }
 0x4d7   :  { %v609_v40 = vmul.f32 %v2562_v16, %v2421_v41  ;;  %v1145_v63 = vmul.f32 %v2479_v55, %v2562_v16 }
 0x4d8   :  { %v1108_v30 = vadd.f32 %v1099_v44, %v1084_v21  ;;  %v1053_v21 = vmul.f32 %v2501_v24, %v2553_v19  ;;  %v549_v38 = vadd.f32 %v541_v39, %v517_v36  ;;  %v1081_v44 = vmul.f32 %v2477_v18, %v2529_v53 }
 0x4d9   :  { %v516_v49 = vadd.f32 %v512_v7, %v500_v46  ;;  %v560_v18 = vmul.f32 %v2555_v11, %v2161_v32 }
 0x4da   :  { %v1116_v2 = vadd.f32 %v1112_v54, %v1108_v30  ;;  %v565_v24 = vadd.f32 %v561_v62, %v549_v38 }
 0x4db   :  { %v1101_v13 = vpop.permute.xlu0 %1100  ;;  %v1163_v22 = vpop.permute.xlu1 %1162  ;;  %v548_v15 = vadd.f32 %v539_v23, %v516_v49 }
 0x4dc   :  { %v597_v39 = vadd.f32 %v589_v45, %v565_v24  ;;  %v2611_v49 = vpop.permute.xlu2 %534 }
 0x4dd   :  { %v564_v8 = vadd.f32 %v560_v18, %v548_v15 }
 0x4df   :  { %v596_v46 = vadd.f32 %v587_v3, %v564_v8 }
 0x4e3   :  { %v1133_v25 = vpop.permute.xlu0 %1132  ;;  %v2607_v10 = vpop.permute.xlu1 %486 }
 0x4eb   :  { %v1069_v30 = vpop.permute.xlu0 %1068 }
 0x4ec   :  { %v1077_v47 = vadd.f32 %v1069_v30, %v1053_v21  ;;  %v608_v30 = vmul.f32 %v2565_v48, %v2412_v35 }
 0x4ee   :  { %v1085_v50 = vadd.f32 %v1081_v44, %v1077_v47  ;;  %v612_v41 = vadd.f32 %v608_v30, %v596_v46 }
 0x4f0   :  { %v1109_v54 = vadd.f32 %v1101_v13, %v1085_v50  ;;  %v613_v13 = vadd.f32 %v609_v40, %v597_v39  ;;  %v1079_v50 = vmul.f32 %v2448_v58, %v2529_v53 }
 0x4f2   :  { %v1117_v52 = vadd.f32 %v1113_v26, %v1109_v54  ;;  %v645_v21 = vadd.f32 %v637_v9, %v613_v13  ;;  %v1097_v9 = vpop.permute.xlu1 %1096  ;;  %v1111_v54 = vmul.f32 %v2460_v6, %v2548_v34  ;;  %v1110_v6 = vmul.f32 %v2450_v59, %v2555_v11 }
 0x4f3   :  { %v1131_v33 = vpop.permute.xlu0 %1130 }
 0x4f4   :  { %v1141_v43 = vadd.f32 %v1133_v25, %v1117_v52  ;;  %v1140_v23 = vadd.f32 %v1131_v33, %v1116_v2  ;;  %v1143_v33 = vmul.f32 %v2454_v17, %v2562_v16 }
 0x4f6   :  { %v1149_v45 = vadd.f32 %v1145_v63, %v1141_v43  ;;  %v1148_v36 = vadd.f32 %v1144_v12, %v1140_v23  ;;  %v1129_v12 = vpop.permute.xlu2 %1128 }
 0x4f8   :  { %v1173_v32 = vadd.f32 %v1165_v20, %v1149_v45  ;;  %v1172_v47 = vadd.f32 %v1163_v22, %v1148_v36  ;;  %v1051_v20 = vmul.f32 %v2452_v61, %v2553_v19 }
 0x4fa   :  { %v1177_v38 = vadd.f32 %v1173_v32, %v645_v21  ;;  %v585_v58 = vpop.permute.xlu1 %584 }
 0x4fb   :  { %v635_v44 = vpop.permute.xlu0 %634 }
 0x4fc   :  { %v1181_v7 = vadd.f32 %v1177_v38, %v2155_v28  ;;  %v644_v55 = vadd.f32 %v635_v44, %v612_v41 }
 0x4fe   :  { %v1756_v25 = vmul.f32 -1.442695, %v1181_v7  ;;  %v1176_v2 = vadd.f32 %v1172_v47, %v644_v55  ;;  %v1142_v7 = vmul.f32 %v2446_v56, %v2565_v48 }
 0x500   :  { %1820 = vpow2.f32 %v1756_v25  ;;  %v1180_v3 = vadd.f32 %v1176_v2, %v2153_v27 }
 0x502   :  { %v1755_v35 = vmul.f32 -1.442695, %v1180_v3  ;;  %v1127_v55 = vpop.permute.xlu1 %1126 }
 0x503   :  { %v1065_v62 = vpop.permute.xlu0 %1064 }
 0x504   :  { %1822 = vpow2.f32 %v1755_v35  ;;  %v1075_v26 = vadd.f32 %v1065_v62, %v1051_v20 }
 0x506   :  { %v1821_v15 = vpop.eup %1820  ;;  %v1083_v22 = vadd.f32 %v1079_v50, %v1075_v26 }
 0x507   :  { %v1197_v24 = vadd.f32 1.0, %v1821_v15  ;;  %v1844_v15 = vld [vmem:[%s3062_s1 + $0x18] sm:$0xff] }
 0x508   :  { %v1107_v39 = vadd.f32 %v1097_v9, %v1083_v22 }
 0x509   :  { %1824 = vrcp.f32 %v1197_v24  ;;  %vm1248_vm11 = vweird.f32 %v1197_v24  ;;  %v1254_v17 = vand.u32 2147483648, %v1197_v24  ;;  %v1252_v44 = vand.u32 2147483647, %v1197_v24 }
 0x50a   :  { %v1823_v18 = vpop.eup %1822  ;;  %v1115_v52 = vadd.f32 %v1111_v54, %v1107_v39  ;;  %v467_v54 = vmul.f32 %v2553_v19, %v2346_v1  ;;  %v466_v39 = vmul.f32 %v2512_v4, %v2344_v0  ;;  %v559_v1 = vmul.f32 %v2548_v34, %v2159_v31 }
 0x50b   :  { %v1196_v61 = vadd.f32 1.0, %v1823_v18  ;;  %v537_v40 = vpop.permute.xlu0 %536  ;;  %v1255_v3 = vor.u32 1.1754944e-38, %v1254_v17  ;;  %vm1253_vm15 = vcmp.eq.f32.partialorder %v1252_v44, 8.507059e+37 }
 0x50c   :  { %v1139_v63 = vadd.f32 %v1129_v12, %v1115_v52  ;;  %v498_v18 = vadd.f32 %v2607_v10, %v466_v39  ;;  %v510_v52 = vmul.f32 %v2540_v14, %v2348_v60  ;;  %v511_v12 = vmul.f32 %v2529_v53, %v2359_v5 }
 0x50d   :  { %1826 = vrcp.f32 %v1196_v61  ;;  %v1237_v47 = vand.u32 2147483647, %v1196_v61  ;;  %v1239_v25 = vand.u32 2147483648, %v1196_v61  ;;  %vm1233_vm14 = vweird.f32 %v1196_v61 }
 0x50e   :  { %v2621_v8 = vadd.f32 %v1143_v33, %v1139_v63  ;;  %v606_v5 = vmul.f32 %v2565_v48, %v2398_v37 }
 0x50f   :  { %v1825_v43 = vpop.eup %1824  ;;  %v1240_v9 = vor.u32 1.1754944e-38, %v1239_v25  ;;  %vm1238_vm2 = vcmp.eq.f32.partialorder %v1237_v47, 8.507059e+37 }
 0x510   :  { %v1244_v23 = vmul.f32 %v1825_v43, %v1197_v24  ;;  %vm1249_vm10 = vweird.f32 %v1825_v43 }
 0x511   :  { %vm1250_vm12 = vmor %vm1248_vm11, %vm1249_vm10 }
 0x512   :  { %v1245_v46 = vsub.f32 1.0, %v1244_v23 }
 0x513   :  { %v1827_v13 = vpop.eup %1826  ;;  %v1095_v45 = vpop.permute.xlu0 %1094 }
 0x514   :  { %v1106_v36 = vadd.f32 %v1095_v45, %v2577_v42  ;;  %v1229_v21 = vmul.f32 %v1827_v13, %v1196_v61  ;;  %v1246_v32 = vmul.f32 %v1825_v43, %v1245_v46  ;;  %vm1234_vm13 = vweird.f32 %v1827_v13  ;;  %v633_v46 = vpop.permute.xlu2 %632 }
 0x515   :  { %vm1235_vm0 = vmor %vm1233_vm14, %vm1234_vm13  ;;  %v514_v61 = vadd.f32 %v510_v52, %v498_v18 }
 0x516   :  { %v1114_v30 = vadd.f32 %v1110_v6, %v1106_v36  ;;  %v1230_v38 = vsub.f32 1.0, %v1229_v21  ;;  %v1247_v41 = vadd.f32 %v1825_v43, %v1246_v32  ;;  %v3127_v6 = vld [vmem:[#allocation17_spill] sm:$0xff] }
 0x517   :  { %v546_v23 = vadd.f32 %v2611_v49, %v514_v61  ;;  %v631_v49 = vpop.permute.xlu1 %630 }
 0x518   :  { %v1138_v59 = vadd.f32 %v1127_v55, %v1114_v30  ;;  %v1231_v2 = vmul.f32 %v1827_v13, %v1230_v38  ;;  %v1251_v42 = vsel %vm1250_vm12, %v1825_v43, %v1247_v41 }
 0x519   :  { %v2628_v62 = vsel %vm1253_vm15, %v1255_v3, %v1251_v42 }
 0x51a   :  { %v1146_v20 = vadd.f32 %v1142_v7, %v1138_v59  ;;  %v1232_v35 = vadd.f32 %v1827_v13, %v1231_v2  ;;  %v2640_v22 = vmul.f32 %v1844_v15, %v2628_v62  ;;  %v3129_v7 = vld [vmem:[#allocation11_spill] sm:$0xff] }
 0x51b   :  { %v583_v43 = vpop.permute.xlu0 %582 }
 0x51c   :  { %v1236_v50 = vsel %vm1235_vm0, %v1827_v13, %v1232_v35  ;;  %v1159_v30 = vpop.permute.xlu2 %1158 }
 0x51d   :  { %v2630_v56 = vsel %vm1238_vm2, %v1240_v9, %v1236_v50 }
 0x51e   :  { %v2634_v26 = vmul.f32 %v2630_v56, %v2053_v57  ;;  %v499_v57 = vadd.f32 %v2567_v51, %v467_v54  ;;  %v558_v51 = vmul.f32 %v2555_v11, %v2157_v29  ;;  %v1170_v29 = vadd.f32 %v1159_v30, %v1146_v20 }
 0x520   :  { %v1807_v24 = vpack.i.bf16 %v2634_v26, %v2640_v22  ;;  %v515_v33 = vadd.f32 %v511_v12, %v499_v57  ;;  %v562_v10 = vadd.f32 %v558_v51, %v546_v23 }
 0x522   :  { %1808 = vrot.lane.b32.xlu0 %v1807_v24, %s1876_s24  ;;  %v547_v63 = vadd.f32 %v537_v40, %v515_v33  ;;  %v594_v60 = vadd.f32 %v583_v43, %v562_v10  ;;  %v607_v40 = vmul.f32 %v2562_v16, %v3127_v6 }
 0x523   :  { %v1161_v45 = vpop.permute.xlu0 %1160 }
 0x524   :  { %v563_v0 = vadd.f32 %v559_v1, %v547_v63  ;;  %v610_v36 = vadd.f32 %v606_v5, %v594_v60  ;;  %v1171_v31 = vadd.f32 %v1161_v45, %v2621_v8  ;;  %v2685_v5 = vld [vmem:[%s3062_s1] sm:$0xff]  ;;  %v3130_v45 = vld [vmem:[#allocation6_spill] sm:$0xff] }
 0x526   :  { %v595_v13 = vadd.f32 %v585_v58, %v563_v0  ;;  %v642_v32 = vadd.f32 %v631_v49, %v610_v36  ;;  %v3128_v58 = vld [vmem:[#allocation12_spill] sm:$0xff]  ;;  %v3131_v36 = vld [vmem:[#allocation5_spill] sm:$0xff] }
 0x528   :  { %v611_v21 = vadd.f32 %v607_v40, %v595_v13  ;;  %v1174_v41 = vadd.f32 %v1170_v29, %v642_v32  ;;  %v3134_v29 = vld [vmem:[#allocation23_spill] sm:$0xff] }
 0x52a   :  { %v643_v17 = vadd.f32 %v633_v46, %v611_v21  ;;  %v1178_v55 = vadd.f32 %v1174_v41, %v3129_v7  ;;  %v2674_v46 = vld [vmem:[%s3062_s1 + $0x8] sm:$0xff]  ;;  %v3132_v21 = vld [vmem:[#allocation7_spill] sm:$0xff]  ;;  %s1886_s1 = smov 96  }
 0x52c   :  { %v1175_v38 = vadd.f32 %v1171_v31, %v643_v17  ;;  %v1753_v47 = vmul.f32 -1.442695, %v1178_v55  ;;  %v3133_v31 = vld [vmem:[#allocation8_spill] sm:$0xff]  ;;  %v3137_v55 = vld [vmem:[#allocation14_spill] sm:$0xff] }
 0x52e   :  { %v1179_v44 = vadd.f32 %v1175_v38, %v3128_v58  ;;  %v3135_v38 = vld [vmem:[#allocation13_spill] sm:$0xff] }
 0x52f   :  { %v651_v41 = vmul.f32 %v3135_v38, %v3134_v29 }
 0x530   :  { %v1754_v37 = vmul.f32 -1.442695, %v1179_v44  ;;  %v3136_v44 = vld [vmem:[#allocation25_spill] sm:$0xff] }
 0x532   :  { %1828 = vpow2.f32 %v1754_v37  ;;  %v652_v37 = vmul.f32 %v3137_v55, %v3136_v44 }
 0x533   :  { %1830 = vpow2.f32 %v1753_v47  ;;  %v3138_v47 = vld [vmem:[#allocation21_spill] sm:$0xff] }
 0x538   :  { %v1829_v25 = vpop.eup %1828 }
 0x539   :  { %v1831_v59 = vpop.eup %1830  ;;  %v1195_v2 = vadd.f32 1.0, %v1829_v25  ;;  %v650_v25 = vmul.f32 %v3137_v55, %v3138_v47 }
 0x53a   :  { %v1194_v42 = vadd.f32 1.0, %v1831_v59  ;;  %v674_v59 = vmul.f32 %v2540_v14, %v3138_v47 }
 0x53b   :  { %1832 = vrcp.f32 %v1195_v2  ;;  %v1224_v39 = vand.u32 2147483648, %v1195_v2  ;;  %vm1218_vm4 = vweird.f32 %v1195_v2  ;;  %v1222_v57 = vand.u32 2147483647, %v1195_v2 }
 0x53c   :  { %1834 = vrcp.f32 %v1194_v42  ;;  %v1209_v52 = vand.u32 2147483648, %v1194_v42  ;;  %vm1203_vm10 = vweird.f32 %v1194_v42  ;;  %v1207_v61 = vand.u32 2147483647, %v1194_v42 }
 0x53d   :  { %v1225_v33 = vor.u32 1.1754944e-38, %v1224_v39  ;;  %vm1223_vm12 = vcmp.eq.f32.partialorder %v1222_v57, 8.507059e+37  ;;  %v1353_v39 = vld [vmem:[%s3066_s5 + $0xb0] sm:$0xff]  ;;  %v1354_v57 = vld [vmem:[%s3066_s5 + $0xb8] sm:$0xff] }
 0x53e   :  { %v1210_v1 = vor.u32 1.1754944e-38, %v1209_v52  ;;  %vm1208_vm13 = vcmp.eq.f32.partialorder %v1207_v61, 8.507059e+37  ;;  %1371 = vmatpush.msra.mxu1 %v1353_v39  ;;  %1400 = vmatpush.msra.mxu0 %v1354_v57  ;;  %v1352_v52 = vld [vmem:[%s3066_s5 + $0xa8] sm:$0xff]  ;;  %v1338_v39 = vld [vmem:[%s3066_s5 + $0x38] sm:$0xff] }
 0x53f   :  { %v3143_v61 = vld [vmem:[#allocation18_spill] sm:$0xff] }
 0x540   :  { %1401 = vmatpush.msra.mxu0 %v1352_v52  ;;  %v1336_v52 = vld [vmem:[%s3066_s5 + $0x28] sm:$0xff] }
 0x541   :  { %v1833_v8 = vpop.eup %1832 }
 0x542   :  { %v1835_v3 = vpop.eup %1834  ;;  %v1214_v35 = vmul.f32 %v1833_v8, %v1195_v2  ;;  %vm1219_vm3 = vweird.f32 %v1833_v8  ;;  %v675_v2 = vmul.f32 %v2529_v53, %v3134_v29 }
 0x543   :  { %v1199_v20 = vmul.f32 %v1835_v3, %v1194_v42  ;;  %vm1204_vm5 = vweird.f32 %v1835_v3  ;;  %vm1220_vm6 = vmor %vm1218_vm4, %vm1219_vm3  ;;  %v3139_v42 = vld [vmem:[#allocation27_spill] sm:$0xff] }
 0x544   :  { %v1215_v9 = vsub.f32 1.0, %v1214_v35  ;;  %vm1205_vm11 = vmor %vm1203_vm10, %vm1204_vm5  ;;  %v3140_v35 = vld [vmem:[#allocation16_spill] sm:$0xff] }
 0x545   :  { %v1200_v50 = vsub.f32 1.0, %v1199_v20  ;;  %v698_v20 = vmul.f32 %v3140_v35, %v3138_v47 }
 0x546   :  { %v1216_v15 = vmul.f32 %v1833_v8, %v1215_v9  ;;  %v676_v9 = vmul.f32 %v2540_v14, %v3136_v44 }
 0x547   :  { %v1201_v24 = vmul.f32 %v1835_v3, %v1200_v50  ;;  %v700_v50 = vmul.f32 %v3140_v35, %v3136_v44 }
 0x548   :  { %v1217_v54 = vadd.f32 %v1833_v8, %v1216_v15  ;;  %v3141_v15 = vld [vmem:[#allocation15_spill] sm:$0xff] }
 0x549   :  { %v1202_v18 = vadd.f32 %v1835_v3, %v1201_v24  ;;  %v701_v24 = vmul.f32 %v3141_v15, %v3139_v42 }
 0x54a   :  { %v1221_v12 = vsel %vm1220_vm6, %v1833_v8, %v1217_v54  ;;  %v653_v8 = vmul.f32 %v3135_v38, %v3139_v42  ;;  %v699_v54 = vmul.f32 %v3141_v15, %v3134_v29 }
 0x54b   :  { %v1206_v63 = vsel %vm1205_vm11, %v1835_v3, %v1202_v18  ;;  %v2667_v43 = vsel %vm1223_vm12, %v1225_v33, %v1221_v12  ;;  %v677_v3 = vmul.f32 %v2529_v53, %v3139_v42  ;;  %v1351_v18 = vld [vmem:[%s3066_s5 + $0xa0] sm:$0xff]  ;;  %v3142_v12 = vld [vmem:[#allocation24_spill] sm:$0xff] }
 0x54c   :  { %v2669_v0 = vsel %vm1208_vm13, %v1210_v1, %v1206_v63  ;;  %v2678_v13 = vmul.f32 %v2674_v46, %v2667_v43  ;;  %1372 = vmatpush.msra.mxu1 %v1351_v18  ;;  %v731_v33 = vmul.f32 %v3143_v61, %v3142_v12  ;;  %v3144_v63 = vld [vmem:[#allocation26_spill] sm:$0xff]  ;;  %v3145_v1 = vld [vmem:[#allocation19_spill] sm:$0xff]  ;;  %v755_v57 = vmul.f32 %v2562_v16, %v3142_v12  ;;  %v1335_v18 = vld [vmem:[%s3066_s5 + $0x20] sm:$0xff] }
 0x54d   :  { %v2689_v6 = vmul.f32 %v2685_v5, %v2669_v0 }
 0x594   :  { %v1809_v23 = vpop.permute.xlu0 %1808 }
 0x595   :  { %v1811_v51 = vunpack.i.h.bf16 %v1809_v23  ;;  %v1810_v10 = vunpack.i.l.bf16 %v1809_v23  ;;  %v732_v23 = vmul.f32 %v3145_v1, %v3144_v63 }
 0x597   :  { %v1271_v60 = vsel %vm810_vm7, %v2678_v13, %v1810_v10  ;;  %v1270_v40 = vsel %vm810_vm7, %v2689_v6, %v1811_v51  ;;  %v3146_v51 = vld [vmem:[#allocation22_spill] sm:$0xff] }
 0x598   :  { %1286 = vmatpush.msra.mxu3 %v1271_v60  ;;  %v730_v10 = vmul.f32 %v3145_v1, %v3146_v51  ;;  %v1349_v60 = vld [vmem:[%s3066_s5 + $0x90] sm:$0xff] }
 0x599   :  { %1373 = vmatpush.msra.mxu1 %v1349_v60  ;;  %v1332_v60 = vld [vmem:[%s3066_s5 + $0x8] sm:$0xff] }
 0x59a   :  { %1287 = vmatpush.msra.mxu3 %v1270_v40  ;;  %v1350_v40 = vld [vmem:[%s3066_s5 + $0x98] sm:$0xff] }
 0x59b   :  { %1757 = vmatmul.msk.f32.vlgmr.msra.gmra.mxu3 %vm73_vm1, %v3130_v45  ;;  %v1347_v45 = vld [vmem:[%s3066_s5 + $0x80] sm:$0xff]  ;;  %1402 = vmatpush.msra.mxu0 %v1350_v40  ;;  %v3149_v40 = vld [vmem:[#allocation20_spill] sm:$0xff] }
 0x59c   :  { %1374 = vmatpush.msra.mxu1 %v1347_v45 }
 0x5a3   :  { %1758 = vmatmul.msk.f32.gmra.mxu3 %vm73_vm1, %v3131_v36  ;;  %v1348_v36 = vld [vmem:[%s3066_s5 + $0x88] sm:$0xff] }
 0x5a4   :  { %1403 = vmatpush.msra.mxu0 %v1348_v36  ;;  %v779_v36 = vmul.f32 %v3149_v40, %v3142_v12 }
 0x5ab   :  { %1759 = vmatmul.msk.f32.gmra.mxu3 %vm73_vm1, %v3132_v21  ;;  %v1345_v21 = vld [vmem:[%s3066_s5 + $0x70] sm:$0xff] }
 0x5ac   :  { %1375 = vmatpush.msra.mxu1 %v1345_v21 }
 0x5b3   :  { %1760 = vmatmul.msk.f32.gmra.mxu3 %vm73_vm1, %v3133_v31  ;;  %v1346_v31 = vld [vmem:[%s3066_s5 + $0x78] sm:$0xff] }
 0x5b4   :  { %1404 = vmatpush.msra.mxu0 %v1346_v31 }
 0x61e   :  { %v2701_v49 = vpop.f32.mrf.mxu3 }
 0x61f   :  { %1303 = vrot.lane.b32.xlu1 %v2701_v49, %s1876_s24 }
 0x626   :  { %v2705_v32 = vpop.f32.mrf.mxu3 }
 0x627   :  { %1305 = vrot.lane.b32.xlu0 %v2705_v32, %s1876_s24 }
 0x62e   :  { %v1295_v17 = vpop.f32.mrf.mxu3 }
 0x62f   :  { %1311 = vrot.lane.b32.xlu2 %v1295_v17, %s1879_s3 }
 0x636   :  { %v1298_v30 = vpop.f32.mrf.mxu3 }
 0x637   :  { %1321 = vrot.lane.b32.xlu2 %v1295_v17, %s1876_s24  ;;  %1323 = vrot.lane.b32.xlu0 %v1298_v30, %s1876_s24  ;;  %v756_v17 = vmul.f32 %v2565_v48, %v3144_v63 }
 0x638   :  { %1313 = vrot.lane.b32.xlu1 %v1298_v30, %s1879_s3  ;;  %v754_v30 = vmul.f32 %v2565_v48, %v3146_v51 }
 0x63f   :  { %660 = vrot.lane.b32.xlu2 %v651_v41, %s1886_s1  ;;  %662 = vrot.lane.b32.xlu0 %v652_v37, %s1886_s1  ;;  %v1343_v41 = vld [vmem:[%s3066_s5 + $0x60] sm:$0xff]  ;;  %v3147_v37 = vld [vmem:[#allocation28_spill] sm:$0xff] }
 0x640   :  { %658 = vrot.lane.b32.xlu1 %v650_v25, %s1886_s1  ;;  %v733_v25 = vmul.f32 %v3143_v61, %v3147_v37  ;;  %1376 = vmatpush.msra.mxu1 %v1343_v41  ;;  %v781_v45 = vmul.f32 %v3149_v40, %v3147_v37 }
 0x647   :  { %682 = vrot.lane.b32.xlu2 %v674_v59, %s1879_s3  ;;  %684 = vrot.lane.b32.xlu0 %v675_v2, %s1879_s3  ;;  %v1344_v59 = vld [vmem:[%s3066_s5 + $0x68] sm:$0xff]  ;;  %v1341_v2 = vld [vmem:[%s3066_s5 + $0x50] sm:$0xff] }
 0x648   :  { %664 = vrot.lane.b32.xlu1 %v653_v8, %s1886_s1  ;;  %v1342_v8 = vld [vmem:[%s3066_s5 + $0x58] sm:$0xff]  ;;  %1405 = vmatpush.msra.mxu0 %v1344_v59 }
 0x649   :  { %1377 = vmatpush.msra.mxu1 %v1341_v2 }
 0x64a   :  { %1406 = vmatpush.msra.mxu0 %v1342_v8 }
 0x64f   :  { %688 = vrot.lane.b32.xlu2 %v677_v3, %s1879_s3  ;;  %706 = vrot.lane.b32.xlu0 %v698_v20, %s1876_s24  ;;  %v1339_v3 = vld [vmem:[%s3066_s5 + $0x40] sm:$0xff]  ;;  %v1340_v20 = vld [vmem:[%s3066_s5 + $0x48] sm:$0xff] }
 0x650   :  { %686 = vrot.lane.b32.xlu1 %v676_v9, %s1879_s3  ;;  %v1337_v9 = vld [vmem:[%s3066_s5 + $0x30] sm:$0xff]  ;;  %1378 = vmatpush.msra.mxu1 %v1339_v3 }
 0x651   :  { %1407 = vmatpush.msra.mxu0 %v1340_v20 }
 0x652   :  { %1379 = vmatpush.msra.mxu1 %v1337_v9 }
 0x653   :  { %1408 = vmatpush.msra.mxu0 %v1338_v39 }
 0x654   :  { %1380 = vmatpush.msra.mxu1 %v1335_v18 }
 0x655   :  { %1409 = vmatpush.msra.mxu0 %v1336_v52 }
 0x657   :  { %710 = vrot.lane.b32.xlu2 %v700_v50, %s1876_s24  ;;  %712 = vrot.lane.b32.xlu0 %v701_v24, %s1876_s24  ;;  %v3148_v50 = vld [vmem:[#allocation29_spill] sm:$0xff] }
 0x658   :  { %708 = vrot.lane.b32.xlu1 %v699_v54, %s1876_s24  ;;  %v778_v24 = vmul.f32 %v3148_v50, %v3146_v51  ;;  %v757_v54 = vmul.f32 %v2562_v16, %v3147_v37  ;;  %v780_v21 = vmul.f32 %v3148_v50, %v3144_v63 }
 0x65f   :  { %740 = vrot.lane.b32.xlu2 %v731_v33, %s1886_s1  ;;  %742 = vrot.lane.b32.xlu0 %v732_v23, %s1886_s1  ;;  %v1333_v33 = vld [vmem:[%s3066_s5 + $0x10] sm:$0xff]  ;;  %v1334_v23 = vld [vmem:[%s3066_s5 + $0x18] sm:$0xff] }
 0x660   :  { %738 = vrot.lane.b32.xlu1 %v730_v10, %s1886_s1  ;;  %1381 = vmatpush.msra.mxu1 %v1333_v33  ;;  %v1331_v10 = vld [vmem:[%s3066_s5] sm:$0xff]  ;;  %v647_v33 = vmul.f32 %v2553_v19, %v3134_v29  ;;  %s1887_s5 = smov [#allocation2]  }
 0x661   :  { %1410 = vmatpush.msra.mxu0 %v1334_v23 }
 0x662   :  { %1382 = vmatpush.msra.mxu1 %v1331_v10  ;;  %v649_v10 = vmul.f32 %v2553_v19, %v3139_v42 }
 0x663   :  { %1411 = vmatpush.msra.mxu0 %v1332_v60 }
 0x667   :  { %766 = vrot.lane.b32.xlu2 %v756_v17, %s1879_s3  ;;  %762 = vrot.lane.b32.xlu0 %v754_v30, %s1879_s3 }
 0x668   :  { %744 = vrot.lane.b32.xlu1 %v733_v25, %s1886_s1 }
 0x66f   :  { %786 = vrot.lane.b32.xlu2 %v778_v24, %s1876_s24  ;;  %768 = vrot.lane.b32.xlu0 %v757_v54, %s1879_s3  ;;  %v646_v24 = vmul.f32 %v2512_v4, %v3138_v47  ;;  %v1327_v54 = vsel %vm810_vm7, %v2634_v26, %v2701_v49  ;;  %v1328_v26 = vsel %vm810_vm7, %v2640_v22, %v2705_v32 }
 0x670   :  { %764 = vrot.lane.b32.xlu1 %v755_v57, %s1879_s3 }
 0x677   :  { %792 = vrot.lane.b32.xlu2 %v781_v45, %s1876_s24  ;;  %788 = vrot.lane.b32.xlu0 %v779_v36, %s1876_s24 }
 0x678   :  { %790 = vrot.lane.b32.xlu1 %v780_v21, %s1876_s24 }
 0x680   :  { %1589 = vrot.lane.b32.xlu1 %v3129_v7, %s1879_s3 }
 0x689   :  { %v1312_v31 = vpop.permute.xlu2 %1311 }
 0x691   :  { %v1304_v17 = vpop.permute.xlu1 %1303  ;;  %v1322_v25 = vpop.permute.xlu2 %1321 }
 0x692   :  { %v1317_v30 = vsel %vm810_vm7, %v2689_v6, %v1304_v17 }
 0x693   :  { %v1319_v41 = vsel %vm860_vm8, %v1317_v30, %v1312_v31  ;;  %v648_v31 = vmul.f32 %v2512_v4, %v3136_v44 }
 0x694   :  { %1761 = vmatmul.msk.f32.vlgmr.msra.gmra.mxu1 %vm921_vm9, %v1319_v41  ;;  %1765 = vmatmul.msk.f32.vlgmr.msra.gmra.mxu0 %vm921_vm9, %v1319_v41 }
 0x699   :  { %v1306_v59 = vpop.permute.xlu0 %1305  ;;  %v661_v2 = vpop.permute.xlu2 %660 }
 0x69a   :  { %v1318_v3 = vsel %vm810_vm7, %v2678_v13, %v1306_v59  ;;  %v1329_v13 = vsel %vm860_vm8, %v1327_v54, %v1322_v25  ;;  %v671_v23 = vadd.f32 %v661_v2, %v647_v33 }
 0x6a1   :  { %v683_v7 = vpop.permute.xlu2 %682 }
 0x6a9   :  { %v1324_v8 = vpop.permute.xlu0 %1323  ;;  %v689_v18 = vpop.permute.xlu2 %688 }
 0x6aa   :  { %v1314_v20 = vpop.permute.xlu1 %1313  ;;  %v1330_v36 = vsel %vm860_vm8, %v1328_v26, %v1324_v8  ;;  %v723_v8 = vmul.f32 %v2548_v34, %v3142_v12 }
 0x6ab   :  { %v1320_v9 = vsel %vm860_vm8, %v1318_v3, %v1314_v20 }
 0x6ac   :  { %1762 = vmatmul.msk.f32.gmra.mxu1 %vm921_vm9, %v1320_v9  ;;  %1766 = vmatmul.msk.f32.gmra.mxu0 %vm921_vm9, %v1320_v9 }
 0x6b1   :  { %v663_v6 = vpop.permute.xlu0 %662  ;;  %v711_v29 = vpop.permute.xlu2 %710 }
 0x6b2   :  { %v659_v39 = vpop.permute.xlu1 %658  ;;  %v672_v17 = vadd.f32 %v663_v6, %v648_v31 }
 0x6b3   :  { %v670_v57 = vadd.f32 %v659_v39, %v646_v24 }
 0x6b4   :  { %1763 = vmatmul.msk.f32.gmra.mxu1 %vm921_vm9, %v1329_v13  ;;  %1767 = vmatmul.msk.f32.gmra.mxu0 %vm921_vm9, %v1329_v13  ;;  %v725_v13 = vmul.f32 %v2548_v34, %v3147_v37 }
 0x6b5   :  { %v2877_v52 = vadd.f32 %v683_v7, %v670_v57  ;;  %v724_v7 = vmul.f32 %v2555_v11, %v3144_v63 }
 0x6b9   :  { %v685_v47 = vpop.permute.xlu0 %684  ;;  %v741_v32 = vpop.permute.xlu2 %740 }
 0x6ba   :  { %v695_v49 = vadd.f32 %v685_v47, %v671_v23  ;;  %v665_v60 = vpop.permute.xlu1 %664 }
 0x6bb   :  { %v673_v45 = vadd.f32 %v665_v60, %v649_v10 }
 0x6bc   :  { %1764 = vmatmul.msk.f32.gmra.mxu1 %vm921_vm9, %v1330_v36  ;;  %1768 = vmatmul.msk.f32.gmra.mxu0 %vm921_vm9, %v1330_v36 }
 0x6bd   :  { %v697_v21 = vadd.f32 %v689_v18, %v673_v45 }
 0x6c1   :  { %v2891_v42 = vpop.permute.xlu0 %706  ;;  %v767_v39 = vpop.permute.xlu2 %766 }
 0x6c2   :  { %v687_v30 = vpop.permute.xlu1 %686 }
 0x6c3   :  { %v696_v41 = vadd.f32 %v687_v30, %v672_v17 }
 0x6c5   :  { %v720_v22 = vadd.f32 %v711_v29, %v696_v41 }
 0x6c7   :  { %v728_v44 = vadd.f32 %v724_v7, %v720_v22 }
 0x6c9   :  { %v713_v25 = vpop.permute.xlu0 %712 }
 0x6ca   :  { %v721_v59 = vadd.f32 %v713_v25, %v697_v21  ;;  %v709_v2 = vpop.permute.xlu1 %708 }
 0x6cb   :  { %v719_v3 = vadd.f32 %v709_v2, %v695_v49 }
 0x6cc   :  { %v729_v33 = vadd.f32 %v725_v13, %v721_v59 }
 0x6cd   :  { %v727_v20 = vadd.f32 %v723_v8, %v719_v3 }
 0x6cf   :  { %v751_v9 = vadd.f32 %v741_v32, %v727_v20 }
 0x6d1   :  { %v743_v6 = vpop.permute.xlu0 %742 }
 0x6d2   :  { %v752_v24 = vadd.f32 %v743_v6, %v728_v44  ;;  %v2897_v54 = vpop.permute.xlu1 %738 }
 0x6d4   :  { %v776_v57 = vadd.f32 %v767_v39, %v752_v24 }
 0x6d9   :  { %v2901_v18 = vpop.permute.xlu0 %762 }
 0x6da   :  { %v745_v12 = vpop.permute.xlu1 %744 }
 0x6db   :  { %v753_v23 = vadd.f32 %v745_v12, %v729_v33 }
 0x6e1   :  { %v769_v47 = vpop.permute.xlu0 %768 }
 0x6e2   :  { %v2903_v10 = vadd.f32 %v769_v47, %v753_v23  ;;  %v765_v63 = vpop.permute.xlu1 %764 }
 0x6e3   :  { %v2905_v26 = vadd.f32 %v765_v63, %v751_v9 }
 0x6ea   :  { %v791_v49 = vpop.permute.xlu1 %790 }
 0x6eb   :  { %v2907_v60 = vadd.f32 %v791_v49, %v776_v57 }
 0x6f2   :  { %v1590_v33 = vpop.permute.xlu1 %1589 }
 0x711   :  { %v2909_v45 = vpop.f32.mrf.mxu1  ;;  %v2920_v29 = vpop.f32.mrf.mxu0 }
 0x712   :  { %v1429_v36 = vmul.f32 %v2909_v45, %v3137_v55  ;;  %v1453_v37 = vmul.f32 %v2909_v45, %v2540_v14  ;;  %v1477_v21 = vmul.f32 %v2909_v45, %v3140_v35  ;;  %v1509_v31 = vmul.f32 %v2920_v29, %v3145_v1 }
 0x713   :  { %v1557_v17 = vmul.f32 %v2920_v29, %v3148_v50  ;;  %v1533_v30 = vmul.f32 %v2920_v29, %v2565_v48  ;;  %v1501_v63 = vmul.f32 %v2920_v29, %v2555_v11 }
 0x714   :  { %1437 = vrot.lane.b32.xlu2 %v1429_v36, %s1886_s1  ;;  %1461 = vrot.lane.b32.xlu0 %v1453_v37, %s1879_s3 }
 0x715   :  { %1485 = vrot.lane.b32.xlu1 %v1477_v21, %s1876_s24 }
 0x71c   :  { %1517 = vrot.lane.b32.xlu2 %v1509_v31, %s1886_s1  ;;  %1565 = vrot.lane.b32.xlu0 %v1557_v17, %s1876_s24 }
 0x71d   :  { %1541 = vrot.lane.b32.xlu1 %v1533_v30, %s1879_s3 }
 0x729   :  { %v2931_v41 = vpop.f32.mrf.mxu1  ;;  %v2942_v59 = vpop.f32.mrf.mxu0 }
 0x72a   :  { %v1478_v22 = vmul.f32 %v2931_v41, %v3141_v15  ;;  %v1454_v32 = vmul.f32 %v2931_v41, %v2529_v53  ;;  %v1430_v25 = vmul.f32 %v2931_v41, %v3135_v38  ;;  %v1534_v2 = vmul.f32 %v2942_v59, %v2562_v16 }
 0x72b   :  { %v1558_v8 = vmul.f32 %v2942_v59, %v3149_v40  ;;  %v1510_v3 = vmul.f32 %v2942_v59, %v3143_v61  ;;  %v1426_v29 = vmul.f32 %v2931_v41, %v2553_v19 }
 0x72c   :  { %1487 = vrot.lane.b32.xlu2 %v1478_v22, %s1876_s24  ;;  %1463 = vrot.lane.b32.xlu1 %v1454_v32, %s1879_s3 }
 0x72d   :  { %1439 = vrot.lane.b32.xlu0 %v1430_v25, %s1886_s1 }
 0x731   :  { %v2953_v20 = vpop.f32.mrf.mxu1  ;;  %v2964_v6 = vpop.f32.mrf.mxu0 }
 0x732   :  { %v1455_v7 = vmul.f32 %v2953_v20, %v2540_v14  ;;  %v1431_v9 = vmul.f32 %v2953_v20, %v3137_v55  ;;  %v1479_v44 = vmul.f32 %v2953_v20, %v3140_v35  ;;  %v1559_v24 = vmul.f32 %v2964_v6, %v3148_v50 }
 0x733   :  { %v1511_v14 = vmul.f32 %v2964_v6, %v3145_v1  ;;  %v1535_v55 = vmul.f32 %v2964_v6, %v2565_v48 }
 0x734   :  { %1543 = vrot.lane.b32.xlu2 %v1534_v2, %s1879_s3  ;;  %1567 = vrot.lane.b32.xlu1 %v1558_v8, %s1876_s24 }
 0x735   :  { %1519 = vrot.lane.b32.xlu0 %v1510_v3, %s1886_s1 }
 0x739   :  { %v2975_v35 = vpop.f32.mrf.mxu1  ;;  %v2986_v48 = vpop.f32.mrf.mxu0 }
 0x73a   :  { %v1432_v39 = vmul.f32 %v2975_v35, %v3135_v38  ;;  %v1480_v50 = vmul.f32 %v2975_v35, %v3141_v15  ;;  %v1456_v1 = vmul.f32 %v2975_v35, %v2529_v53  ;;  %v1512_v57 = vmul.f32 %v2986_v48, %v3143_v61  ;;  %v787_v53 = vpop.permute.xlu2 %786 }
 0x73b   :  { %v1536_v38 = vmul.f32 %v2986_v48, %v2562_v16  ;;  %v1560_v15 = vmul.f32 %v2986_v48, %v3149_v40  ;;  %v789_v40 = vpop.permute.xlu0 %788 }
 0x73c   :  { %1465 = vrot.lane.b32.xlu2 %v1455_v7, %s1879_s3  ;;  %1441 = vrot.lane.b32.xlu1 %v1431_v9, %s1886_s1 }
 0x73d   :  { %1489 = vrot.lane.b32.xlu0 %v1479_v44, %s1876_s24 }
 0x742   :  { %v3007_v16 = vpop.permute.xlu2 %792 }
 0x744   :  { %1569 = vrot.lane.b32.xlu2 %v1559_v24, %s1876_s24  ;;  %1521 = vrot.lane.b32.xlu1 %v1511_v14, %s1886_s1  ;;  %v1502_v24 = vmul.f32 %v2942_v59, %v2548_v34  ;;  %v1503_v59 = vmul.f32 %v2964_v6, %v2555_v11 }
 0x745   :  { %1545 = vrot.lane.b32.xlu0 %v1535_v55, %s1879_s3 }
 0x74c   :  { %1491 = vrot.lane.b32.xlu1 %v1480_v50, %s1876_s24  ;;  %1443 = vrot.lane.b32.xlu2 %v1432_v39, %s1886_s1 }
 0x74d   :  { %1467 = vrot.lane.b32.xlu0 %v1456_v1, %s1879_s3 }
 0x754   :  { %1547 = vrot.lane.b32.xlu1 %v1536_v38, %s1879_s3  ;;  %1523 = vrot.lane.b32.xlu2 %v1512_v57, %s1886_s1  ;;  %v799_v38 = vadd.f32 %v789_v40, %v2905_v26 }
 0x755   :  { %1571 = vrot.lane.b32.xlu0 %v1560_v15, %s1876_s24  ;;  %v1427_v15 = vmul.f32 %v2953_v20, %v2512_v4 }
 0x75c   :  { %1595 = vrot.lane.b32.xlu1 %v2155_v28, %s1879_s3  ;;  %1591 = vrot.lane.b32.xlu2 %v3128_v58, %s1879_s3  ;;  %v1425_v28 = vmul.f32 %v2909_v45, %v2512_v4  ;;  %v1428_v4 = vmul.f32 %v2975_v35, %v2553_v19  ;;  %v801_v19 = vadd.f32 %v3007_v16, %v2903_v10 }
 0x75d   :  { %1593 = vrot.lane.b32.xlu0 %v2153_v27, %s1879_s3  ;;  %v718_v27 = vadd.f32 %v2891_v42, %v2877_v52 }
 0x764   :  { %1611 = vrot.lane.b32.xlu2 %v2685_v5, %s1876_s24 }
 0x765   :  { %1613 = vrot.lane.b32.xlu0 %v2674_v46, %s1876_s24  ;;  %v722_v46 = vmul.f32 %v2555_v11, %v3146_v51  ;;  %v1504_v11 = vmul.f32 %v2986_v48, %v2548_v34  ;;  %v1621_v48 = vsub.f32 1.0, %v2669_v0 }
 0x767   :  { %v726_v36 = vadd.f32 %v722_v46, %v718_v27 }
 0x769   :  { %v750_v21 = vadd.f32 %v2897_v54, %v726_v36 }
 0x76b   :  { %v774_v31 = vadd.f32 %v2901_v18, %v750_v21 }
 0x76d   :  { %v798_v22 = vadd.f32 %v787_v53, %v774_v31 }
 0x76e   :  { %v1438_v61 = vpop.permute.xlu2 %1437 }
 0x76f   :  { %v1449_v58 = vadd.f32 %v1438_v61, %v1425_v28 }
 0x776   :  { %v1518_v13 = vpop.permute.xlu2 %1517 }
 0x786   :  { %v1488_v12 = vpop.permute.xlu2 %1487  ;;  %v1462_v23 = vpop.permute.xlu0 %1461 }
 0x787   :  { %v1473_v47 = vadd.f32 %v1462_v23, %v1449_v58  ;;  %v1486_v5 = vpop.permute.xlu1 %1485 }
 0x789   :  { %v1497_v49 = vadd.f32 %v1486_v5, %v1473_v47 }
 0x78b   :  { %v1505_v37 = vadd.f32 %v1501_v63, %v1497_v49 }
 0x78d   :  { %v1529_v45 = vadd.f32 %v1518_v13, %v1505_v37 }
 0x78e   :  { %v1544_v17 = vpop.permute.xlu2 %1543  ;;  %v1566_v30 = vpop.permute.xlu0 %1565 }
 0x78f   :  { %v1542_v52 = vpop.permute.xlu1 %1541 }
 0x790   :  { %v1553_v42 = vadd.f32 %v1542_v52, %v1529_v45 }
 0x792   :  { %v1577_v32 = vadd.f32 %v1566_v30, %v1553_v42 }
 0x794   :  { %v1581_v25 = vadd.f32 %v1577_v32, %v798_v22 }
 0x796   :  { %v1601_v2 = vadd.f32 %v1590_v33, %v1581_v25  ;;  %v1466_v51 = vpop.permute.xlu2 %1465 }
 0x798   :  { %1836 = vtanh.f32 %v1601_v2 }
 0x79e   :  { %v1837_v8 = vpop.eup %1836  ;;  %v1570_v3 = vpop.permute.xlu2 %1569 }
 0x79f   :  { %v1464_v7 = vpop.permute.xlu1 %1463  ;;  %v1440_v54 = vpop.permute.xlu0 %1439  ;;  %1629 = vrot.lane.b32.xlu1 %v1837_v8, %s1876_s24 }
 0x7a0   :  { %v1450_v18 = vadd.f32 %v1440_v54, %v1426_v29  ;;  %v1622_v54 = vsub.f32 1.0, %v2667_v43 }
 0x7a2   :  { %v1474_v9 = vadd.f32 %v1464_v7, %v1450_v18 }
 0x7a4   :  { %v1498_v44 = vadd.f32 %v1488_v12, %v1474_v9 }
 0x7a6   :  { %v1506_v14 = vadd.f32 %v1502_v24, %v1498_v44  ;;  %v1444_v55 = vpop.permute.xlu2 %1443 }
 0x7a7   :  { %v1568_v39 = vpop.permute.xlu1 %1567  ;;  %v1520_v50 = vpop.permute.xlu0 %1519  ;;  %v1452_v49 = vadd.f32 %v1444_v55, %v1428_v4  ;;  %v1623_v55 = vsub.f32 1.0, %v2630_v56 }
 0x7a8   :  { %v1530_v1 = vadd.f32 %v1520_v50, %v1506_v14  ;;  %v1624_v14 = vsub.f32 1.0, %v2628_v62  ;;  %v3150_v50 = vld [vmem:[#allocation10_spill] sm:$0xff] }
 0x7aa   :  { %v1554_v57 = vadd.f32 %v1544_v17, %v1530_v1  ;;  %v1620_v1 = vmul.f32 %v2628_v62, %v3150_v50 }
 0x7ac   :  { %v1578_v41 = vadd.f32 %v1568_v39, %v1554_v57 }
 0x7ae   :  { %v1524_v53 = vpop.permute.xlu2 %1523  ;;  %v1582_v13 = vadd.f32 %v1578_v41, %v799_v38  ;;  %v3151_v38 = vld [vmem:[#allocation9_spill] sm:$0xff] }
 0x7af   :  { %v1442_v61 = vpop.permute.xlu1 %1441  ;;  %v1490_v33 = vpop.permute.xlu0 %1489  ;;  %v1619_v41 = vmul.f32 %v2630_v56, %v3151_v38 }
 0x7b0   :  { %v1451_v28 = vadd.f32 %v1442_v61, %v1427_v15 }
 0x7b2   :  { %v1475_v58 = vadd.f32 %v1466_v51, %v1451_v28 }
 0x7b4   :  { %v1499_v27 = vadd.f32 %v1490_v33, %v1475_v58 }
 0x7b6   :  { %v1507_v12 = vadd.f32 %v1503_v59, %v1499_v27  ;;  %v1592_v23 = vpop.permute.xlu2 %1591 }
 0x7b7   :  { %v1522_v47 = vpop.permute.xlu1 %1521  ;;  %v1546_v5 = vpop.permute.xlu0 %1545  ;;  %v1602_v46 = vadd.f32 %v1592_v23, %v1582_v13 }
 0x7b8   :  { %v1531_v26 = vadd.f32 %v1522_v47, %v1507_v12 }
 0x7b9   :  { %1838 = vtanh.f32 %v1602_v46 }
 0x7ba   :  { %v1555_v40 = vadd.f32 %v1546_v5, %v1531_v26 }
 0x7bc   :  { %v1579_v63 = vadd.f32 %v1570_v3, %v1555_v40 }
 0x7be   :  { %v1583_v20 = vadd.f32 %v1579_v63, %v2907_v60  ;;  %v1612_v34 = vpop.permute.xlu2 %1611 }
 0x7bf   :  { %v1492_v36 = vpop.permute.xlu1 %1491  ;;  %v1839_v37 = vpop.eup %1838  ;;  %v1617_v10 = vmul.f32 %v1612_v34, %v2669_v0 }
 0x7c0   :  { %v1468_v21 = vpop.permute.xlu0 %1467  ;;  %1631 = vrot.lane.b32.xlu2 %v1839_v37, %s1876_s24 }
 0x7c1   :  { %v1476_v45 = vadd.f32 %v1468_v21, %v1452_v49 }
 0x7c3   :  { %v1500_v6 = vadd.f32 %v1492_v36, %v1476_v45 }
 0x7c5   :  { %v1508_v31 = vadd.f32 %v1504_v11, %v1500_v6 }
 0x7c7   :  { %v1532_v17 = vadd.f32 %v1524_v53, %v1508_v31  ;;  %v1548_v52 = vpop.permute.xlu1 %1547 }
 0x7c8   :  { %v1572_v42 = vpop.permute.xlu0 %1571 }
 0x7c9   :  { %v1556_v30 = vadd.f32 %v1548_v52, %v1532_v17 }
 0x7cb   :  { %v1580_v60 = vadd.f32 %v1572_v42, %v1556_v30 }
 0x7cd   :  { %v1584_v35 = vadd.f32 %v1580_v60, %v801_v19 }
 0x7cf   :  { %v1596_v22 = vpop.permute.xlu1 %1595 }
 0x7d0   :  { %v1594_v32 = vpop.permute.xlu0 %1593  ;;  %v1604_v25 = vadd.f32 %v1596_v22, %v1584_v35 }
 0x7d1   :  { %v1603_v2 = vadd.f32 %v1594_v32, %v1583_v20 }
 0x7d2   :  { %1840 = vtanh.f32 %v1604_v25 }
 0x7d3   :  { %1842 = vtanh.f32 %v1603_v2 }
 0x7d8   :  { %v1841_v51 = vpop.eup %1840  ;;  %v1614_v7 = vpop.permute.xlu0 %1613 }
 0x7d9   :  { %v1843_v8 = vpop.eup %1842  ;;  %1635 = vrot.lane.b32.xlu1 %v1841_v51, %s1876_s24  ;;  %v1618_v9 = vmul.f32 %v1614_v7, %v2667_v43 }
 0x7da   :  { %1633 = vrot.lane.b32.xlu0 %v1843_v8, %s1876_s24  ;;  %s1673_s24 = sshll.u32 %s1887_s5, 4  ;;  %s1674_s24 = int_to_ptr.vmem [resolvable:$true] %s1673_s24 }
 0x811   :  { %v1630_v29 = vpop.permute.xlu1 %1629 }
 0x812   :  { %v1641_v16 = vmul.f32 %v1630_v29, %v1621_v48 }
 0x814   :  { %v1645_v3 = vadd.f32 %v1641_v16, %v1617_v10 }
 0x816   :  { %1653 = vrot.lane.b32.xlu2 %v1645_v3, %s1886_s1 }
 0x81a   :  { %v1632_v18 = vpop.permute.xlu2 %1631 }
 0x81b   :  { %v1642_v44 = vmul.f32 %v1632_v18, %v1622_v54 }
 0x81d   :  { %v1646_v24 = vadd.f32 %v1642_v44, %v1618_v9 }
 0x81f   :  { %1655 = vrot.lane.b32.xlu0 %v1646_v24, %s1886_s1 }
 0x84b   :  { %v1636_v39 = vpop.permute.xlu1 %1635 }
 0x84c   :  { %v1634_v0 = vpop.permute.xlu0 %1633  ;;  %v1644_v57 = vmul.f32 %v1636_v39, %v1624_v14 }
 0x84d   :  { %v1643_v15 = vmul.f32 %v1634_v0, %v1623_v55 }
 0x84e   :  { %v1648_v53 = vadd.f32 %v1644_v57, %v1620_v1 }
 0x84f   :  { %v1647_v43 = vadd.f32 %v1643_v15, %v1619_v41 }
 0x850   :  { %1659 = vrot.lane.b32.xlu2 %v1648_v53, %s1886_s1 }
 0x851   :  { %1657 = vrot.lane.b32.xlu1 %v1647_v43, %s1886_s1  ;;  %s1888_s1 = smov 128  }
 0x870   :  { %v1654_v61 = vpop.permute.xlu2 %1653 }
 0x871   :  { %1665 = vst.msk [vmem:[#allocation2] sm:$0xff] %vm810_vm7, %v1654_v61 }
 0x891   :  { %v1656_v13 = vpop.permute.xlu0 %1655 }
 0x892   :  { %1666 = vst.msk [vmem:[#allocation2 + $0x8] sm:$0xff] %vm810_vm7, %v1656_v13 }
 0x8aa   :  { %v1660_v33 = vpop.permute.xlu2 %1659 }
 0x8ab   :  { %1668 = vst.msk [vmem:[#allocation2 + $0x18] sm:$0xff] %vm810_vm7, %v1660_v33 }
 0x8c3   :  { %v1658_v62 = vpop.permute.xlu1 %1657 }
 0x8c4   :  { %1667 = vst.msk [vmem:[#allocation2 + $0x10] sm:$0xff] %vm810_vm7, %v1658_v62 }
 0x8c5   :  { %1681 = dma.vmem_to_hbm [thread:$0]  %s1674_s24, 512, %s1676_s27, [#allocation3], %s1888_s1, %s1888_s1, %s1875_s6  }
 0x8c6   :  { %1871 = dma.done.wait [#allocation3], 512  }
 0x8c7   :  { %1872 = vsyncadd [#allocation3], 4294966784 }
 0x8c8   :  { %1686 = vsyncpa [#allocation3], 1 }

</bundles_post_ra>
